<compile_context>
chip_gen: v6e
topology: v6e:2x2x1
jax: 0.10.0
libtpu: 0.0.40
codegen_flags: <defaults>
</compile_context>

<pallas_src>
import jax
import jax.numpy as jnp
from jax.experimental import pallas as pl
from jax.experimental.pallas import tpu as pltpu


_OUT_ROWS = 8  # pad the 2 confidence rows to one full sublane tile (unmasked stores)


# ---------------------------------------------------------------------------
# Kernel factory: both match heads (Conv1x1 -> ReLU -> BN folded, x2, then
# Conv1x1) on a lane-dense (C, TN) tile, statically unrolled over TB batch
# elements per grid step.
# ---------------------------------------------------------------------------
def _make_heads_kernel(tb, split_l2):
    if not split_l2:
        # v6e / v7x: stacked block-diagonal layer-2 (one 2Hx2H weight load).
        def kernel(x_ref, m_ref, w1_ref, b1_ref, w2_ref, b2_ref,
                   w3_ref, b3_ref, out_ref):
            w1 = w1_ref[...]; b1 = b1_ref[...]
            w2 = w2_ref[...]; b2 = b2_ref[...]
            w3 = w3_ref[...]; b3 = b3_ref[...]
            for b in range(tb):
                xb = (x_ref[b] * m_ref[b]).astype(jnp.bfloat16)          # (C, TN)
                h1 = jnp.dot(w1, xb, preferred_element_type=jnp.float32) + b1
                h1 = jnp.maximum(h1, 0.0).astype(jnp.bfloat16)           # (2H, TN)
                h2 = jnp.dot(w2, h1, preferred_element_type=jnp.float32) + b2
                h2 = jnp.maximum(h2, 0.0).astype(jnp.bfloat16)           # (2H, TN)
                out_ref[b] = jnp.dot(w3, h2,
                                     preferred_element_type=jnp.float32) + b3
        return kernel

    # v4 / v5e (128x128 MXU tiles): two independent (H,H) matmuls avoid
    # multiplying the zero blocks of the block-diagonal weight.
    def kernel(x_ref, m_ref, w1_ref, b1_ref, w2v_ref, w2m_ref, b2_ref,
               w3v_ref, w3m_ref, b3_ref, out_ref):
        w1 = w1_ref[...]; b1 = b1_ref[...]
        w2v = w2v_ref[...]; w2m = w2m_ref[...]; b2 = b2_ref[...]
        w3v = w3v_ref[...]; w3m = w3m_ref[...]; b3 = b3_ref[...]
        H = w2v.shape[0]
        for b in range(tb):
            xb = (x_ref[b] * m_ref[b]).astype(jnp.bfloat16)              # (C, TN)
            h1 = jnp.dot(w1, xb, preferred_element_type=jnp.float32) + b1
            h1 = jnp.maximum(h1, 0.0).astype(jnp.bfloat16)               # (2H, TN)
            h2v = jnp.dot(w2v, h1[:H], preferred_element_type=jnp.float32) + b2[:H]
            h2m = jnp.dot(w2m, h1[H:], preferred_element_type=jnp.float32) + b2[H:]
            h2v = jnp.maximum(h2v, 0.0).astype(jnp.bfloat16)
            h2m = jnp.maximum(h2m, 0.0).astype(jnp.bfloat16)
            out_ref[b] = (jnp.dot(w3v, h2v, preferred_element_type=jnp.float32)
                          + jnp.dot(w3m, h2m, preferred_element_type=jnp.float32)
                          + b3)
    return kernel


# ---------------------------------------------------------------------------
# Adaptive tile selection (single step for small problems; bounded-VMEM tiles
# with >= several pipelined steps when the problem scales).
# ---------------------------------------------------------------------------
def _vmem_bytes(tb, tn, C, H2, w_bytes):
    x_blk = tb * C * tn * 4 * 2            # f32 input block, double-buffered
    m_blk = tb * tn * 4 * 2                # mask block
    o_blk = tb * _OUT_ROWS * tn * 4 * 2    # f32 output block, double-buffered
    h_live = 2 * H2 * tn * 4               # live h1 + h2 intermediates (f32 upper bound)
    return x_blk + m_blk + o_blk + h_live + 2 * w_bytes


def _choose_tiles(B, N, C, H2, w_bytes, budget=14 << 20):
    # budget kept under the smallest default scoped-VMEM limit (v5e: 16 MiB),
    # which also leaves ample headroom on v7x's 64 MiB physical VMEM.
    tb_cands = [d for d in range(min(B, 8), 0, -1) if B % d == 0]
    if N <= 512:
        tn_cands = [N]
    else:
        tn_cands = [c for c in (512, 384, 256, 128) if N % c == 0] or [N]
    for tn in tn_cands:           # prefer lane-dense tiles first
        for tb in tb_cands:
            if _vmem_bytes(tb, tn, C, H2, w_bytes) <= budget:
                return tb, tn
    # TODO(synk): no padding path for awkward N that neither divides nor fits;
    # fall back to the smallest candidates.
    return tb_cands[-1], tn_cands[-1]


# ---------------------------------------------------------------------------
# Wrapper around pallas_call.
# ---------------------------------------------------------------------------
def match_heads(x, mask, packed, *, layer2_split=False):
    """x: (B, C, N) f32 features (original HBM layout, no relayout),
    mask: (B, 1, N) f32 objectness masks.
    packed: output of pack_heads(..., layer2_split=layer2_split).
    Returns (confidence_vla, confidence), each (B, N) float32."""
    B, C, N = x.shape
    weights = packed
    H2 = int(weights[0].shape[0])
    w_bytes = sum(int(w.size) * w.dtype.itemsize for w in weights)

    TB, TN = _choose_tiles(B, N, C, H2, w_bytes)
    grid = (B // TB, max(N // TN, 1))

    def const_spec(p):
        return pl.BlockSpec(p.shape, lambda i, j: (0,) * p.ndim)

    in_specs = [pl.BlockSpec((TB, C, TN), lambda i, j: (i, 0, j)),
                pl.BlockSpec((TB, 1, TN), lambda i, j: (i, 0, j))]
    in_specs += [const_spec(p) for p in weights]

    out = pl.pallas_call(
        _make_heads_kernel(TB, layer2_split),
        out_shape=jax.ShapeDtypeStruct((B, _OUT_ROWS, N), jnp.float32),
        grid=grid,
        in_specs=in_specs,
        out_specs=pl.BlockSpec((TB, _OUT_ROWS, TN), lambda i, j: (i, 0, j)),
        compiler_params=pltpu.CompilerParams(
            dimension_semantics=("parallel", "parallel")),
    )(x, mask, *weights)

    return out[:, 0, :], out[:, 1, :]


# ---------------------------------------------------------------------------
# Parameter prep: fold inference-mode BatchNorm (applied AFTER ReLU) into the
# next conv exactly:  conv(s*y + t) = (W*diag(s)) y + (b + W t).
# ---------------------------------------------------------------------------
def _fold_head(p):
    w1, b1, s1, t1, w2, b2, s2, t2, w3, b3 = p
    w2f = w2 * s1.T
    b2f = b2 + w2 @ t1
    w3f = w3 * s2.T
    b3f = b3 + w3 @ t2
    return (w1, b1), (w2f, b2f), (w3f, b3f)


def pack_heads(pv, pm, *, layer2_split=False):
    """Stack/fold the `match_vla` and `match` heads into one weight set.
    Row 0 of the (padded) output = match_vla head, row 1 = match head."""
    (w1v, b1v), (w2v, b2v), (w3v, b3v) = _fold_head(pv)
    (w1m, b1m), (w2m, b2m), (w3m, b3m) = _fold_head(pm)
    H = w1v.shape[0]

    W1 = jnp.concatenate([w1v, w1m], 0).astype(jnp.bfloat16)            # (2H, C)
    B1 = jnp.concatenate([b1v, b1m], 0).astype(jnp.float32)             # (2H, 1)
    B2 = jnp.concatenate([b2v, b2m], 0).astype(jnp.float32)             # (2H, 1)
    B3 = (jnp.zeros((_OUT_ROWS, 1), jnp.float32)
          .at[0].set(b3v[0]).at[1].set(b3m[0]))                         # (8, 1)

    if layer2_split:
        def pad_rows(w, row):
            out = jnp.zeros((_OUT_ROWS,) + w.shape[1:], jnp.float32)
            return out.at[row].set(w[0]).astype(jnp.bfloat16)
        W2v = w2v.astype(jnp.bfloat16)                                   # (H, H)
        W2m = w2m.astype(jnp.bfloat16)                                   # (H, H)
        W3v = pad_rows(w3v, 0)                                           # (8, H)
        W3m = pad_rows(w3m, 1)                                           # (8, H)
        return (W1, B1, W2v, W2m, B2, W3v, W3m, B3)

    zHH = jnp.zeros((H, H), jnp.float32)
    W2 = jnp.concatenate([jnp.concatenate([w2v, zHH], 1),
                          jnp.concatenate([zHH, w2m], 1)], 0).astype(jnp.bfloat16)  # (2H, 2H)
    W3 = (jnp.zeros((_OUT_ROWS, 2 * H), jnp.float32)
          .at[0, :H].set(w3v[0]).at[1, H:].set(w3m[0])).astype(jnp.bfloat16)        # (8, 2H)
    return (W1, B1, W2, B2, W3, B3)


def _prefer_layer2_split():
    """Split layer-2 on chips whose MXU tiles are 128x128 (v4 / v5e); keep it
    stacked on the 256x256 MXUs of v6e / v7x."""
    try:
        kind = jax.devices()[0].device_kind.lower()
    except Exception:
        return False
    return ('v5 lite' in kind) or ('v5e' in kind) or ('v4' in kind)


# ---------------------------------------------------------------------------
# Raw (unfolded) parameter init for one head: Conv/Conv/Conv + 2x BN (folded
# to scale/shift form for inference mode).
# ---------------------------------------------------------------------------
def init_head_params(key, hidden):
    ks = jax.random.split(key, 14)
    lim = 1.0 / jnp.sqrt(hidden)
    eps = 1e-5

    def fold_bn(gamma, beta, mean, var):
        s = gamma / jnp.sqrt(var + eps)
        return s, beta - mean * s

    w1 = jax.random.uniform(ks[0], (hidden, hidden), jnp.float32, -lim, lim)
    b1 = jax.random.uniform(ks[1], (hidden, 1), jnp.float32, -lim, lim)
    s1, t1 = fold_bn(jax.random.uniform(ks[2], (hidden, 1), jnp.float32, 0.5, 1.5),
                     jax.random.uniform(ks[3], (hidden, 1), jnp.float32, -0.1, 0.1),
                     jax.random.normal(ks[4], (hidden, 1), jnp.float32) * 0.1,
                     jax.random.uniform(ks[5], (hidden, 1), jnp.float32, 0.5, 1.5))

    w2 = jax.random.uniform(ks[6], (hidden, hidden), jnp.float32, -lim, lim)
    b2 = jax.random.uniform(ks[7], (hidden, 1), jnp.float32, -lim, lim)
    s2, t2 = fold_bn(jax.random.uniform(ks[8], (hidden, 1), jnp.float32, 0.5, 1.5),
                     jax.random.uniform(ks[9], (hidden, 1), jnp.float32, -0.1, 0.1),
                     jax.random.normal(ks[10], (hidden, 1), jnp.float32) * 0.1,
                     jax.random.uniform(ks[11], (hidden, 1), jnp.float32, 0.5, 1.5))

    w3 = jax.random.uniform(ks[12], (1, hidden), jnp.float32, -lim, lim)
    b3 = jax.random.uniform(ks[13], (1, 1), jnp.float32, -lim, lim)
    return (w1, b1, s1, t1, w2, b2, s2, t2, w3, b3)


# ---------------------------------------------------------------------------
# HAMMatchModule.forward (use_spa=False).  Reshape/broadcast glue is plain
# JAX; the hot path (masking + both 1x1-conv MLP heads) is one Pallas kernel.
# ---------------------------------------------------------------------------
def ham_match_forward(data_dict, packed_params, *, layer2_split=False):
    len_nun_max = data_dict['lang_feat_list'].shape[1]
    query_proposal = data_dict['query_features']                         # (B, C, N) f32
    B, C, N = query_proposal.shape

    # TODO(synk): the PLACM fusion decoder (and MultiWindowsFusion for
    # use_spa=True) is not defined in the reference source; it is treated as
    # identity here, so all len_nun_max repeats of the fused features are
    # identical and the heads are evaluated once per batch element, with the
    # (B, N) confidences broadcast across the L repeats afterwards.
    objectness_masks = jnp.reshape(
        data_dict['objectness_masks'].astype(jnp.float32), (B, 1, N))    # permute of (B,N,1)

    confidence_vla, confidence = match_heads(
        query_proposal, objectness_masks, packed_params, layer2_split=layer2_split)

    def rep(a):                                                          # (B,N) -> (B*L, N)
        return jnp.broadcast_to(a[:, None, :], (B, len_nun_max, N)).reshape(
            B * len_nun_max, N)

    out = dict(data_dict)
    out['cluster_ref_vla'] = rep(confidence_vla)
    out['cluster_ref'] = rep(confidence)
    return out


# ---------------------------------------------------------------------------
# Pure-JAX reference of the implemented path (identity fusion decoder), using
# the raw (unfolded, f32) parameters -- validates BN folding + head stacking.
# ---------------------------------------------------------------------------
def reference_forward(data_dict, raw_params):
    L = data_dict['lang_feat_list'].shape[1]
    x = data_dict['query_features'].astype(jnp.float32)                  # (B,C,N)
    B, C, N = x.shape
    mask = jnp.reshape(data_dict['objectness_masks'].astype(jnp.float32), (B, 1, N))
    xm = x * mask

    def head(p):
        w1, b1, s1, t1, w2, b2, s2, t2, w3, b3 = p
        h = jnp.einsum('oc,bcn->bon', w1, xm) + b1
        h = jnp.maximum(h, 0.0) * s1 + t1
        h = jnp.einsum('oc,bcn->bon', w2, h) + b2
        h = jnp.maximum(h, 0.0) * s2 + t2
        h = jnp.einsum('oc,bcn->bon', w3, h) + b3
        return h[:, 0, :]

    def rep(a):
        return jnp.broadcast_to(a[:, None, :], (B, L, N)).reshape(B * L, N)

    return rep(head(raw_params['vla'])), rep(head(raw_params['match']))


if __name__ == "__main__":
    batch, len_max = 2, 4
    hidden = 128          # hidden_size (module default)
    num_prop = 128        # num_proposals (scaled down from 256)
    num_key = 64
    sent_len = 8
    lang_size = 256

    root = jax.random.PRNGKey(0)
    keys = jax.random.split(root, 12)

    data_dict = {
        'lang_feat_list': jax.random.normal(keys[0], (batch, len_max, sent_len, 300), jnp.float32),
        'lang_fea': jax.random.normal(keys[1], (batch * len_max, sent_len, hidden), jnp.float32),
        'lang_emb': jax.random.normal(keys[2], (batch * len_max, lang_size), jnp.float32),
        'key_features': jax.random.normal(keys[3], (batch, hidden, num_key), jnp.float32),
        'seed_xyz': jax.random.normal(keys[4], (batch, num_key, 3), jnp.float32),
        'last_center': jax.random.normal(keys[5], (batch, num_prop, 3), jnp.float32),
        'last_pred_size': jax.random.uniform(keys[6], (batch, num_prop, 3), jnp.float32),
        'last_objectness_scores': jax.random.normal(keys[7], (batch, num_prop, 1), jnp.float32),
        'query_features': jax.random.normal(keys[8], (batch, hidden, num_prop), jnp.float32),
        'objectness_masks': (jax.random.uniform(keys[9], (batch, num_prop, 1)) > 0.3).astype(jnp.float32),
    }

    raw_params = {
        'vla': init_head_params(keys[10], hidden),
        'match': init_head_params(keys[11], hidden),
    }
    ref_vla, ref_match = reference_forward(data_dict, raw_params)

    # chip-preferred variant
    split = _prefer_layer2_split()
    packed = pack_heads(raw_params['vla'], raw_params['match'], layer2_split=split)
    out = ham_match_forward(data_dict, packed, layer2_split=split)
    jax.block_until_ready(out['cluster_ref_vla'])
    jax.block_until_ready(out['cluster_ref'])

    assert out['cluster_ref_vla'].shape == (batch * len_max, num_prop)
    assert out['cluster_ref'].shape == (batch * len_max, num_prop)
    assert jnp.allclose(out['cluster_ref_vla'], ref_vla, atol=5e-2, rtol=5e-2)
    assert jnp.allclose(out['cluster_ref'], ref_match, atol=5e-2, rtol=5e-2)

    # also validate the other (stacked vs split layer-2) kernel variant
    packed_alt = pack_heads(raw_params['vla'], raw_params['match'], layer2_split=not split)
    out_alt = ham_match_forward(data_dict, packed_alt, layer2_split=not split)
    jax.block_until_ready(out_alt['cluster_ref'])
    assert jnp.allclose(out_alt['cluster_ref_vla'], ref_vla, atol=5e-2, rtol=5e-2)
    assert jnp.allclose(out_alt['cluster_ref'], ref_match, atol=5e-2, rtol=5e-2)

    print("KERNEL_OK")
</pallas_src>

<mosaic_0001>
module attributes {stable_mosaic.version = 11 : i64} {
  func.func @kernel(%arg0: i32, %arg1: i32, %arg2: memref<2x128x128xf32, #tpu.memory_space<vmem>>, %arg3: memref<2x1x128xf32, #tpu.memory_space<vmem>>, %arg4: memref<256x128xbf16, #tpu.memory_space<vmem>>, %arg5: memref<256x1xf32, #tpu.memory_space<vmem>>, %arg6: memref<256x256xbf16, #tpu.memory_space<vmem>>, %arg7: memref<256x1xf32, #tpu.memory_space<vmem>>, %arg8: memref<8x256xbf16, #tpu.memory_space<vmem>>, %arg9: memref<8x1xf32, #tpu.memory_space<vmem>>, %arg10: memref<2x8x128xf32, #tpu.memory_space<vmem>>) attributes {dimension_semantics = [#tpu.dimension_semantics<parallel>, #tpu.dimension_semantics<parallel>], iteration_bounds = array<i64: 1, 1>, scalar_prefetch = 0 : i64, scratch_operands = 0 : i64, tpu.core_type = #tpu.core_type<tc>, window_params = [{transform_indices = @transform_0, window_bounds = array<i64: 2, 128, 128>}, {transform_indices = @transform_1, window_bounds = array<i64: 2, 1, 128>}, {pipeline_mode = #tpu.pipeline_mode<synchronous>, transform_indices = @transform_2, window_bounds = array<i64: 256, 128>}, {pipeline_mode = #tpu.pipeline_mode<synchronous>, transform_indices = @transform_3, window_bounds = array<i64: 256, 1>}, {pipeline_mode = #tpu.pipeline_mode<synchronous>, transform_indices = @transform_4, window_bounds = array<i64: 256, 256>}, {pipeline_mode = #tpu.pipeline_mode<synchronous>, transform_indices = @transform_5, window_bounds = array<i64: 256, 1>}, {pipeline_mode = #tpu.pipeline_mode<synchronous>, transform_indices = @transform_6, window_bounds = array<i64: 8, 256>}, {pipeline_mode = #tpu.pipeline_mode<synchronous>, transform_indices = @transform_7, window_bounds = array<i64: 8, 1>}, {transform_indices = @transform_8, window_bounds = array<i64: 2, 8, 128>}]} {
    %c0 = arith.constant 0 : index
    %c0_0 = arith.constant 0 : index
    %0 = vector.load %arg4[%c0, %c0_0] : memref<256x128xbf16, #tpu.memory_space<vmem>>, vector<256x128xbf16>
    %c0_1 = arith.constant 0 : index
    %c0_2 = arith.constant 0 : index
    %1 = vector.load %arg5[%c0_1, %c0_2] : memref<256x1xf32, #tpu.memory_space<vmem>>, vector<256x1xf32>
    %c0_3 = arith.constant 0 : index
    %c0_4 = arith.constant 0 : index
    %2 = vector.load %arg6[%c0_3, %c0_4] : memref<256x256xbf16, #tpu.memory_space<vmem>>, vector<256x256xbf16>
    %c0_5 = arith.constant 0 : index
    %c0_6 = arith.constant 0 : index
    %3 = vector.load %arg7[%c0_5, %c0_6] : memref<256x1xf32, #tpu.memory_space<vmem>>, vector<256x1xf32>
    %c0_7 = arith.constant 0 : index
    %c0_8 = arith.constant 0 : index
    %4 = vector.load %arg8[%c0_7, %c0_8] : memref<8x256xbf16, #tpu.memory_space<vmem>>, vector<8x256xbf16>
    %c0_9 = arith.constant 0 : index
    %c0_10 = arith.constant 0 : index
    %5 = vector.load %arg9[%c0_9, %c0_10] : memref<8x1xf32, #tpu.memory_space<vmem>>, vector<8x1xf32>
    %c0_11 = arith.constant 0 : index
    %c0_12 = arith.constant 0 : index
    %c0_13 = arith.constant 0 : index
    %6 = vector.load %arg2[%c0_11, %c0_12, %c0_13] : memref<2x128x128xf32, #tpu.memory_space<vmem>>, vector<1x128x128xf32>
    %7 = vector.shape_cast %6 : vector<1x128x128xf32> to vector<128x128xf32>
    %c0_14 = arith.constant 0 : index
    %c0_15 = arith.constant 0 : index
    %c0_16 = arith.constant 0 : index
    %8 = vector.load %arg3[%c0_14, %c0_15, %c0_16] : memref<2x1x128xf32, #tpu.memory_space<vmem>>, vector<1x1x128xf32>
    %9 = vector.shape_cast %8 : vector<1x1x128xf32> to vector<1x128xf32>
    %10 = vector.broadcast %9 : vector<1x128xf32> to vector<128x128xf32>
    %11 = arith.mulf %7, %10 : vector<128x128xf32>
    %12 = arith.truncf %11 : vector<128x128xf32> to vector<128x128xbf16>
    %cst = arith.constant dense<0.000000e+00> : vector<256x128xf32>
    %13 = tpu.matmul %0, %12, %cst {dimension_numbers = #tpu.dot_dimension_numbers<[1], [0], [0], [1], [0, 0, 1, 1], [], []>} : vector<256x128xbf16>, vector<128x128xbf16>, vector<256x128xf32> -> vector<256x128xf32>
    %14 = vector.broadcast %1 : vector<256x1xf32> to vector<256x128xf32>
    %15 = arith.addf %13, %14 : vector<256x128xf32>
    %cst_17 = arith.constant 0.000000e+00 : f32
    %16 = vector.broadcast %cst_17 : f32 to vector<256x128xf32>
    %17 = arith.maximumf %15, %16 : vector<256x128xf32>
    %18 = arith.truncf %17 : vector<256x128xf32> to vector<256x128xbf16>
    %cst_18 = arith.constant dense<0.000000e+00> : vector<256x128xf32>
    %19 = tpu.matmul %2, %18, %cst_18 {dimension_numbers = #tpu.dot_dimension_numbers<[1], [0], [0], [1], [0, 0, 1, 1], [], []>} : vector<256x256xbf16>, vector<256x128xbf16>, vector<256x128xf32> -> vector<256x128xf32>
    %20 = vector.broadcast %3 : vector<256x1xf32> to vector<256x128xf32>
    %21 = arith.addf %19, %20 : vector<256x128xf32>
    %cst_19 = arith.constant 0.000000e+00 : f32
    %22 = vector.broadcast %cst_19 : f32 to vector<256x128xf32>
    %23 = arith.maximumf %21, %22 : vector<256x128xf32>
    %24 = arith.truncf %23 : vector<256x128xf32> to vector<256x128xbf16>
    %cst_20 = arith.constant dense<0.000000e+00> : vector<8x128xf32>
    %25 = tpu.matmul %4, %24, %cst_20 {dimension_numbers = #tpu.dot_dimension_numbers<[1], [0], [0], [1], [0, 0, 1, 1], [], []>} : vector<8x256xbf16>, vector<256x128xbf16>, vector<8x128xf32> -> vector<8x128xf32>
    %26 = vector.broadcast %5 : vector<8x1xf32> to vector<8x128xf32>
    %27 = arith.addf %25, %26 : vector<8x128xf32>
    %c0_21 = arith.constant 0 : index
    %c0_22 = arith.constant 0 : index
    %c0_23 = arith.constant 0 : index
    %28 = vector.load %arg10[%c0_21, %c0_22, %c0_23] : memref<2x8x128xf32, #tpu.memory_space<vmem>>, vector<1x8x128xf32>
    %29 = vector.shape_cast %28 : vector<1x8x128xf32> to vector<8x128xf32>
    %30 = vector.shape_cast %27 : vector<8x128xf32> to vector<1x8x128xf32>
    tpu.vector_store %arg10[%c0_21, %c0_22, %c0_23], %30 {strides = array<i32>} : memref<2x8x128xf32, #tpu.memory_space<vmem>>, vector<1x8x128xf32>,
    %c1 = arith.constant 1 : index
    %c0_24 = arith.constant 0 : index
    %c0_25 = arith.constant 0 : index
    %31 = vector.load %arg2[%c1, %c0_24, %c0_25] : memref<2x128x128xf32, #tpu.memory_space<vmem>>, vector<1x128x128xf32>
    %32 = vector.shape_cast %31 : vector<1x128x128xf32> to vector<128x128xf32>
    %c1_26 = arith.constant 1 : index
    %c0_27 = arith.constant 0 : index
    %c0_28 = arith.constant 0 : index
    %33 = vector.load %arg3[%c1_26, %c0_27, %c0_28] : memref<2x1x128xf32, #tpu.memory_space<vmem>>, vector<1x1x128xf32>
    %34 = vector.shape_cast %33 : vector<1x1x128xf32> to vector<1x128xf32>
    %35 = vector.broadcast %34 : vector<1x128xf32> to vector<128x128xf32>
    %36 = arith.mulf %32, %35 : vector<128x128xf32>
    %37 = arith.truncf %36 : vector<128x128xf32> to vector<128x128xbf16>
    %cst_29 = arith.constant dense<0.000000e+00> : vector<256x128xf32>
    %38 = tpu.matmul %0, %37, %cst_29 {dimension_numbers = #tpu.dot_dimension_numbers<[1], [0], [0], [1], [0, 0, 1, 1], [], []>} : vector<256x128xbf16>, vector<128x128xbf16>, vector<256x128xf32> -> vector<256x128xf32>
    %39 = vector.broadcast %1 : vector<256x1xf32> to vector<256x128xf32>
    %40 = arith.addf %38, %39 : vector<256x128xf32>
    %cst_30 = arith.constant 0.000000e+00 : f32
    %41 = vector.broadcast %cst_30 : f32 to vector<256x128xf32>
    %42 = arith.maximumf %40, %41 : vector<256x128xf32>
    %43 = arith.truncf %42 : vector<256x128xf32> to vector<256x128xbf16>
    %cst_31 = arith.constant dense<0.000000e+00> : vector<256x128xf32>
    %44 = tpu.matmul %2, %43, %cst_31 {dimension_numbers = #tpu.dot_dimension_numbers<[1], [0], [0], [1], [0, 0, 1, 1], [], []>} : vector<256x256xbf16>, vector<256x128xbf16>, vector<256x128xf32> -> vector<256x128xf32>
    %45 = vector.broadcast %3 : vector<256x1xf32> to vector<256x128xf32>
    %46 = arith.addf %44, %45 : vector<256x128xf32>
    %cst_32 = arith.constant 0.000000e+00 : f32
    %47 = vector.broadcast %cst_32 : f32 to vector<256x128xf32>
    %48 = arith.maximumf %46, %47 : vector<256x128xf32>
    %49 = arith.truncf %48 : vector<256x128xf32> to vector<256x128xbf16>
    %cst_33 = arith.constant dense<0.000000e+00> : vector<8x128xf32>
    %50 = tpu.matmul %4, %49, %cst_33 {dimension_numbers = #tpu.dot_dimension_numbers<[1], [0], [0], [1], [0, 0, 1, 1], [], []>} : vector<8x256xbf16>, vector<256x128xbf16>, vector<8x128xf32> -> vector<8x128xf32>
    %51 = vector.broadcast %5 : vector<8x1xf32> to vector<8x128xf32>
    %52 = arith.addf %50, %51 : vector<8x128xf32>
    %c1_34 = arith.constant 1 : index
    %c0_35 = arith.constant 0 : index
    %c0_36 = arith.constant 0 : index
    %53 = vector.load %arg10[%c1_34, %c0_35, %c0_36] : memref<2x8x128xf32, #tpu.memory_space<vmem>>, vector<1x8x128xf32>
    %54 = vector.shape_cast %53 : vector<1x8x128xf32> to vector<8x128xf32>
    %55 = vector.shape_cast %52 : vector<8x128xf32> to vector<1x8x128xf32>
    tpu.vector_store %arg10[%c1_34, %c0_35, %c0_36], %55 {strides = array<i32>} : memref<2x8x128xf32, #tpu.memory_space<vmem>>, vector<1x8x128xf32>,
    return
  }
  func.func @transform_0(%arg0: i32, %arg1: i32) -> (i32, i32, i32) {
    %c0_i32 = arith.constant 0 : i32
    %c0_i32_0 = arith.constant 0 : i32
    return %arg0, %c0_i32, %arg1 : i32, i32, i32
  }
  func.func @transform_1(%arg0: i32, %arg1: i32) -> (i32, i32, i32) {
    %c0_i32 = arith.constant 0 : i32
    %c0_i32_0 = arith.constant 0 : i32
    return %arg0, %c0_i32, %arg1 : i32, i32, i32
  }
  func.func @transform_2(%arg0: i32, %arg1: i32) -> (i32, i32) {
    %c0_i32 = arith.constant 0 : i32
    %c0_i32_0 = arith.constant 0 : i32
    %c0_i32_1 = arith.constant 0 : i32
    return %c0_i32, %c0_i32_0 : i32, i32
  }
  func.func @transform_3(%arg0: i32, %arg1: i32) -> (i32, i32) {
    %c0_i32 = arith.constant 0 : i32
    %c0_i32_0 = arith.constant 0 : i32
    %c0_i32_1 = arith.constant 0 : i32
    return %c0_i32, %c0_i32_0 : i32, i32
  }
  func.func @transform_4(%arg0: i32, %arg1: i32) -> (i32, i32) {
    %c0_i32 = arith.constant 0 : i32
    %c0_i32_0 = arith.constant 0 : i32
    %c0_i32_1 = arith.constant 0 : i32
    return %c0_i32, %c0_i32_0 : i32, i32
  }
  func.func @transform_5(%arg0: i32, %arg1: i32) -> (i32, i32) {
    %c0_i32 = arith.constant 0 : i32
    %c0_i32_0 = arith.constant 0 : i32
    %c0_i32_1 = arith.constant 0 : i32
    return %c0_i32, %c0_i32_0 : i32, i32
  }
  func.func @transform_6(%arg0: i32, %arg1: i32) -> (i32, i32) {
    %c0_i32 = arith.constant 0 : i32
    %c0_i32_0 = arith.constant 0 : i32
    %c0_i32_1 = arith.constant 0 : i32
    return %c0_i32, %c0_i32_0 : i32, i32
  }
  func.func @transform_7(%arg0: i32, %arg1: i32) -> (i32, i32) {
    %c0_i32 = arith.constant 0 : i32
    %c0_i32_0 = arith.constant 0 : i32
    %c0_i32_1 = arith.constant 0 : i32
    return %c0_i32, %c0_i32_0 : i32, i32
  }
  func.func @transform_8(%arg0: i32, %arg1: i32) -> (i32, i32, i32) {
    %c0_i32 = arith.constant 0 : i32
    %c0_i32_0 = arith.constant 0 : i32
    return %arg0, %c0_i32, %arg1 : i32, i32, i32
  }
}

</mosaic_0001>

<bundles_post_ra>
// kernel: tpu_custom_call.1
= control target key start
LH: loop header
LB: loop body
LE: loop exit
PB: predicated region body
PF: predicated region fallthrough
CT: control target
= control target key end

     0   :  { %13 = vsyncpa [#allocation3], 0  ;;  %s3470_s0 = inlined_call_operand.vmem [shape: f32[2,128,128], index: 0, kind: input, shape index: {}]   ;;  %s3471_s1 = inlined_call_operand.vmem [shape: f32[2,1,128], index: 1, kind: input, shape index: {}]   ;;  %s3472_s2 = inlined_call_operand.hbm [shape: bf16[256,128], index: 2, kind: input, shape index: {}]   ;;  %s3473_s3 = inlined_call_operand.vmem [shape: f32[256,1], index: 3, kind: input, shape index: {}]   ;;  %s3474_s4 = inlined_call_operand.vmem [shape: bf16[256,256], index: 4, kind: input, shape index: {}]   ;;  %s3475_s5 = inlined_call_operand.vmem [shape: f32[256,1], index: 5, kind: input, shape index: {}]   ;;  %s3476_s6 = inlined_call_operand.vmem [shape: bf16[8,256], index: 6, kind: input, shape index: {}]   ;;  %s3477_s7 = inlined_call_operand.vmem [shape: f32[8,1], index: 7, kind: input, shape index: {}]   ;;  %s3478_s8 = inlined_call_operand.hbm [shape: f32[2,8,128], index: 8, kind: output, shape index: {}]  }
   0x1   :  { %14 = vsyncpa [#allocation4], 0  ;;  %s2428_s27 = smov [#allocation2]  }
   0x2   :  { %s24_s28 = sshll.u32 %s2428_s27, 4  ;;  %s25_s28 = int_to_ptr.vmem [resolvable:$true] %s24_s28 }
   0x3   :  { %s2392_s29 = scalar_lea.vmem %s25_s28, 2048  ;;  %p2397_p1 = scmp.lt.s32.totalorder %s25_s28, %s25_s28 }
   0x4   :  { %p2393_p0 = scmp.ne.s32.totalorder %s25_s28, %s2392_s29  ;;  %p2398_p2 = scmp.lt.s32.totalorder %s2392_s29, %s2392_s29 }
   0x6   :  { %p2399_p3 = por %p2398_p2, %p2397_p1 }
   0x8   :  { %p2400_p4 = pnand %p2399_p3, %p2393_p0 }
   0xa   :  { %2403 = shalt.err (!%p2400_p4)
}
   0xb   :  { %s2429_s30 = smov 64   ;;  %s2430_s9 = smov 4  }
   0xc   :  { %30 = dma.hbm_to_vmem [thread:$0]  %s3472_s2, 2048, %s25_s28, [#allocation3], %s2429_s30, %s2429_s30, %s2430_s9  }
   0xd   :  { %2424 = dma.done.wait [#allocation3], 2048  }
   0xe   :  { %2425 = vsyncadd [#allocation3], 4294965248  ;;  %v2431_v0 = vmov 0   ;;  %v189_v1 = vld [vmem:[%s3470_s0 + $0x70] sm:$0xff]  ;;  %v190_v2 = vld [vmem:[%s3470_s0 + $0x78] sm:$0xff] }
   0xf   :  { %2299 = vset.pattern.permute.xlu0 %v2431_v0  ;;  %2300 = vset.pattern.permute.xlu1 %v2431_v0  ;;  %v2492_v3 = vld [vmem:[%s3471_s1] ss:$0 sm:$0xff]  ;;  %v107_v6 = vld [vmem:[%s3473_s3 + $0xf0] sm:$0xff]  ;;  %v188_v8 = vld [vmem:[%s3470_s0 + $0x68] sm:$0xff] }
  0x10   :  { %v212_v4 = vmul.f32 %v2492_v3, %v189_v1  ;;  %v213_v5 = vmul.f32 %v2492_v3, %v190_v2  ;;  %v187_v7 = vld [vmem:[%s3470_s0 + $0x60] sm:$0xff]  ;;  %374 = vperm.xlu0 %2299, %v107_v6   ;;  %v211_v10 = vmul.f32 %v2492_v3, %v188_v8  ;;  %v91_v11 = vld [vmem:[%s3473_s3 + $0x70] sm:$0xff]  ;;  %v108_v14 = vld [vmem:[%s3473_s3 + $0xf8] sm:$0xff] }
  0x11   :  { %v210_v9 = vmul.f32 %v2492_v3, %v187_v7  ;;  %v185_v12 = vld [vmem:[%s3470_s0 + $0x50] sm:$0xff]  ;;  %294 = vperm.xlu1 %2300, %v91_v11   ;;  %v186_v15 = vld [vmem:[%s3470_s0 + $0x58] sm:$0xff]  ;;  %v183_v20 = vld [vmem:[%s3470_s0 + $0x40] sm:$0xff] }
  0x12   :  { %v221_v13 = vpack.c.bf16 %v213_v5, %v212_v4  ;;  %v208_v16 = vmul.f32 %v2492_v3, %v185_v12  ;;  %v209_v18 = vmul.f32 %v2492_v3, %v186_v15  ;;  %v92_v19 = vld [vmem:[%s3473_s3 + $0x78] sm:$0xff]  ;;  %v184_v21 = vld [vmem:[%s3470_s0 + $0x48] sm:$0xff]  ;;  %v105_v23 = vld [vmem:[%s3473_s3 + $0xe0] sm:$0xff]  ;;  %v206_v24 = vmul.f32 %v2492_v3, %v183_v20 }
  0x13   :  { %v220_v17 = vpack.c.bf16 %v211_v10, %v210_v9  ;;  %v207_v25 = vmul.f32 %v2492_v3, %v184_v21  ;;  %v106_v26 = vld [vmem:[%s3473_s3 + $0xe8] sm:$0xff]  ;;  %v181_v27 = vld [vmem:[%s3470_s0 + $0x30] sm:$0xff]  ;;  %v182_v28 = vld [vmem:[%s3470_s0 + $0x38] sm:$0xff] }
  0x14   :  { %2180 = vmatprep.subr.bf16.mxu0 %v221_v13  ;;  %379 = vperm.xlu0 %2299, %v108_v14   ;;  %v219_v22 = vpack.c.bf16 %v209_v18, %v208_v16  ;;  %v89_v29 = vld [vmem:[%s3473_s3 + $0x60] sm:$0xff]  ;;  %v90_v30 = vld [vmem:[%s3473_s3 + $0x68] sm:$0xff]  ;;  %v204_v32 = vmul.f32 %v2492_v3, %v181_v27  ;;  %v205_v33 = vmul.f32 %v2492_v3, %v182_v28  ;;  %v103_v38 = vld [vmem:[%s3473_s3 + $0xd0] sm:$0xff] }
  0x15   :  { %2181 = vmatpush3.bf16.msra.mxu0 %v221_v13  ;;  %299 = vperm.xlu1 %2300, %v92_v19   ;;  %v218_v31 = vpack.c.bf16 %v207_v25, %v206_v24  ;;  %v2301_v34 = vld [vmem:[#allocation2] sm:$0xff]   ;;  %v180_v36 = vld [vmem:[%s3470_s0 + $0x28] sm:$0xff]  ;;  %v104_v41 = vld [vmem:[%s3473_s3 + $0xd8] sm:$0xff] }
  0x16   :  { %2182 = vmatprep.subr.bf16.mxu0 %v220_v17  ;;  %v179_v35 = vld [vmem:[%s3470_s0 + $0x20] sm:$0xff]  ;;  %2196 = vmatprep.mubr.bf16.mxu0 %v2301_v34  ;;  %v217_v37 = vpack.c.bf16 %v205_v33, %v204_v32  ;;  %v203_v40 = vmul.f32 %v2492_v3, %v180_v36  ;;  %v177_v42 = vld [vmem:[%s3470_s0 + $0x10] sm:$0xff]  ;;  %v178_v43 = vld [vmem:[%s3470_s0 + $0x18] sm:$0xff] }
  0x17   :  { %v202_v39 = vmul.f32 %v2492_v3, %v179_v35  ;;  %v87_v45 = vld [vmem:[%s3473_s3 + $0x50] sm:$0xff]  ;;  %v200_v46 = vmul.f32 %v2492_v3, %v177_v42  ;;  %v201_v47 = vmul.f32 %v2492_v3, %v178_v43  ;;  %v88_v48 = vld [vmem:[%s3473_s3 + $0x58] sm:$0xff]  ;;  %v175_v49 = vld [vmem:[%s3470_s0] sm:$0xff] }
  0x18   :  { %364 = vperm.xlu0 %2299, %v105_v23   ;;  %v176_v50 = vld [vmem:[%s3470_s0 + $0x8] sm:$0xff]  ;;  %v101_v52 = vld [vmem:[%s3473_s3 + $0xc0] sm:$0xff]  ;;  %v198_v53 = vmul.f32 %v2492_v3, %v175_v49  ;;  %v99_v59 = vld [vmem:[%s3473_s3 + $0xb0] sm:$0xff] }
  0x19   :  { %2183 = vmatpush3.bf16.msra.mxu0 %v220_v17  ;;  %369 = vperm.xlu1 %2300, %v106_v26   ;;  %v216_v44 = vpack.c.bf16 %v203_v40, %v202_v39  ;;  %v215_v51 = vpack.c.bf16 %v201_v47, %v200_v46  ;;  %v199_v54 = vmul.f32 %v2492_v3, %v176_v50  ;;  %v102_v55 = vld [vmem:[%s3473_s3 + $0xc8] sm:$0xff]  ;;  %v85_v57 = vld [vmem:[%s3473_s3 + $0x40] sm:$0xff]  ;;  %v100_v60 = vld [vmem:[%s3473_s3 + $0xb8] sm:$0xff] }
  0x1a   :  { %2184 = vmatprep.subr.bf16.mxu0 %v219_v22  ;;  %v86_v58 = vld [vmem:[%s3473_s3 + $0x48] sm:$0xff]  ;;  %v2303_v62 = vld [vmem:[#allocation2 + $0x10] sm:$0xff]   ;;  %v84_v0 = vld [vmem:[%s3473_s3 + $0x38] sm:$0xff] }
  0x1b   :  { %v214_v56 = vpack.c.bf16 %v199_v54, %v198_v53  ;;  %v2302_v61 = vld [vmem:[#allocation2 + $0x8] sm:$0xff]   ;;  %v83_v63 = vld [vmem:[%s3473_s3 + $0x30] sm:$0xff]  ;;  %v97_v1 = vld [vmem:[%s3473_s3 + $0xa0] sm:$0xff] }
  0x1c   :  { %284 = vperm.xlu0 %2299, %v89_v29   ;;  %v98_v2 = vld [vmem:[%s3473_s3 + $0xa8] sm:$0xff]  ;;  %v2304_v3 = vld [vmem:[#allocation2 + $0x18] sm:$0xff]   ;;  %v81_v4 = vld [vmem:[%s3473_s3 + $0x20] sm:$0xff] }
  0x1d   :  { %2185 = vmatpush3.bf16.msra.mxu0 %v219_v22  ;;  %289 = vperm.xlu1 %2300, %v90_v30   ;;  %v2305_v5 = vld [vmem:[#allocation2 + $0x20] sm:$0xff]   ;;  %v82_v6 = vld [vmem:[%s3473_s3 + $0x28] sm:$0xff]  ;;  %v95_v7 = vld [vmem:[%s3473_s3 + $0x90] sm:$0xff] }
  0x1e   :  { %2186 = vmatprep.subr.bf16.mxu0 %v218_v31  ;;  %v96_v8 = vld [vmem:[%s3473_s3 + $0x98] sm:$0xff]  ;;  %v2306_v9 = vld [vmem:[#allocation2 + $0x28] sm:$0xff]   ;;  %v2307_v10 = vld [vmem:[#allocation2 + $0x30] sm:$0xff]  }
  0x1f   :  { %v79_v11 = vld [vmem:[%s3473_s3 + $0x10] sm:$0xff]  ;;  %v80_v12 = vld [vmem:[%s3473_s3 + $0x18] sm:$0xff]  ;;  %v93_v13 = vld [vmem:[%s3473_s3 + $0x80] sm:$0xff] }
  0x20   :  { %354 = vperm.xlu0 %2299, %v103_v38   ;;  %v94_v14 = vld [vmem:[%s3473_s3 + $0x88] sm:$0xff]  ;;  %v2308_v15 = vld [vmem:[#allocation2 + $0x38] sm:$0xff]   ;;  %v2309_v16 = vld [vmem:[#allocation2 + $0x40] sm:$0xff]  }
  0x21   :  { %2187 = vmatpush3.bf16.msra.mxu0 %v218_v31  ;;  %359 = vperm.xlu1 %2300, %v104_v41   ;;  %v77_v17 = vld [vmem:[%s3473_s3] sm:$0xff]  ;;  %v78_v18 = vld [vmem:[%s3473_s3 + $0x8] sm:$0xff]  ;;  %v171_v19 = vld [vmem:[%s3475_s5 + $0xf0] sm:$0xff] }
  0x22   :  { %2188 = vmatprep.subr.bf16.mxu0 %v217_v37  ;;  %v172_v20 = vld [vmem:[%s3475_s5 + $0xf8] sm:$0xff]  ;;  %v2310_v21 = vld [vmem:[#allocation2 + $0x48] sm:$0xff]   ;;  %v2311_v22 = vld [vmem:[#allocation2 + $0x50] sm:$0xff]  }
  0x23   :  { %v155_v23 = vld [vmem:[%s3475_s5 + $0x70] sm:$0xff]  ;;  %v156_v24 = vld [vmem:[%s3475_s5 + $0x78] sm:$0xff]  ;;  %v169_v25 = vld [vmem:[%s3475_s5 + $0xe0] sm:$0xff] }
  0x24   :  { %274 = vperm.xlu0 %2299, %v87_v45   ;;  %v170_v26 = vld [vmem:[%s3475_s5 + $0xe8] sm:$0xff]  ;;  %v2312_v27 = vld [vmem:[#allocation2 + $0x58] sm:$0xff]   ;;  %v2313_v28 = vld [vmem:[#allocation2 + $0x60] sm:$0xff]  }
  0x25   :  { %2189 = vmatpush3.bf16.msra.mxu0 %v217_v37  ;;  %279 = vperm.xlu1 %2300, %v88_v48   ;;  %v153_v29 = vld [vmem:[%s3475_s5 + $0x60] sm:$0xff]  ;;  %v154_v30 = vld [vmem:[%s3475_s5 + $0x68] sm:$0xff]  ;;  %v167_v31 = vld [vmem:[%s3475_s5 + $0xd0] sm:$0xff] }
  0x26   :  { %2190 = vmatprep.subr.bf16.mxu0 %v216_v44  ;;  %v168_v32 = vld [vmem:[%s3475_s5 + $0xd8] sm:$0xff]  ;;  %v2314_v33 = vld [vmem:[#allocation2 + $0x68] sm:$0xff]   ;;  %v2315_v34 = vld [vmem:[#allocation2 + $0x70] sm:$0xff]  }
  0x27   :  { %v151_v35 = vld [vmem:[%s3475_s5 + $0x50] sm:$0xff]  ;;  %v152_v36 = vld [vmem:[%s3475_s5 + $0x58] sm:$0xff]  ;;  %v165_v37 = vld [vmem:[%s3475_s5 + $0xc0] sm:$0xff] }
  0x28   :  { %344 = vperm.xlu0 %2299, %v101_v52   ;;  %v166_v38 = vld [vmem:[%s3475_s5 + $0xc8] sm:$0xff]  ;;  %v2316_v39 = vld [vmem:[#allocation2 + $0x78] sm:$0xff]   ;;  %v149_v40 = vld [vmem:[%s3475_s5 + $0x40] sm:$0xff] }
  0x29   :  { %2191 = vmatpush3.bf16.msra.mxu0 %v216_v44  ;;  %349 = vperm.xlu1 %2300, %v102_v55   ;;  %v150_v41 = vld [vmem:[%s3475_s5 + $0x48] sm:$0xff]  ;;  %v163_v42 = vld [vmem:[%s3475_s5 + $0xb0] sm:$0xff]  ;;  %v164_v43 = vld [vmem:[%s3475_s5 + $0xb8] sm:$0xff] }
  0x2a   :  { %2192 = vmatprep.subr.bf16.mxu0 %v215_v51  ;;  %v147_v44 = vld [vmem:[%s3475_s5 + $0x30] sm:$0xff]  ;;  %v148_v45 = vld [vmem:[%s3475_s5 + $0x38] sm:$0xff]  ;;  %v161_v46 = vld [vmem:[%s3475_s5 + $0xa0] sm:$0xff] }
  0x2b   :  { %v162_v47 = vld [vmem:[%s3475_s5 + $0xa8] sm:$0xff]  ;;  %v145_v48 = vld [vmem:[%s3475_s5 + $0x20] sm:$0xff]  ;;  %v159_v50 = vld [vmem:[%s3475_s5 + $0x90] sm:$0xff] }
  0x2c   :  { %264 = vperm.xlu0 %2299, %v85_v57   ;;  %v146_v49 = vld [vmem:[%s3475_s5 + $0x28] sm:$0xff]  ;;  %v143_v52 = vld [vmem:[%s3475_s5 + $0x10] sm:$0xff]  ;;  %v144_v53 = vld [vmem:[%s3475_s5 + $0x18] sm:$0xff] }
  0x2d   :  { %2193 = vmatpush3.bf16.msra.mxu0 %v215_v51  ;;  %269 = vperm.xlu1 %2300, %v86_v58   ;;  %v160_v51 = vld [vmem:[%s3475_s5 + $0x98] sm:$0xff]  ;;  %v157_v54 = vld [vmem:[%s3475_s5 + $0x80] sm:$0xff]  ;;  %v158_v55 = vld [vmem:[%s3475_s5 + $0x88] sm:$0xff] }
  0x2e   :  { %2194 = vmatprep.subr.bf16.mxu0 %v214_v56  ;;  %v142_v57 = vld [vmem:[%s3475_s5 + $0x8] sm:$0xff]  ;;  %v174_v58 = vld [vmem:[%s3477_s7] sm:$0xff] }
  0x30   :  { %334 = vperm.xlu0 %2299, %v99_v59  }
  0x31   :  { %2195 = vmatpush3.bf16.msra.mxu0 %v214_v56  ;;  %339 = vperm.xlu1 %2300, %v100_v60   ;;  %v141_v56 = vld [vmem:[%s3475_s5] sm:$0xff] }
  0x34   :  { %2197 = vmatmul.mubr.bf16.vlgmr.msra.gmra.mxu0 %v2302_v61  ;;  %254 = vperm.xlu0 %2299, %v83_v63  }
  0x35   :  { %2200 = vmatprep.mubr.bf16.mxu0 %v2303_v62  ;;  %259 = vperm.xlu1 %2300, %v84_v0  }
  0x38   :  { %324 = vperm.xlu0 %2299, %v97_v1  }
  0x39   :  { %329 = vperm.xlu1 %2300, %v98_v2  }
  0x3c   :  { %2201 = vmatmul.mubr.bf16.gmra.mxu0 %v2304_v3  ;;  %244 = vperm.xlu0 %2299, %v81_v4  }
  0x3d   :  { %2204 = vmatprep.mubr.bf16.mxu0 %v2305_v5  ;;  %249 = vperm.xlu1 %2300, %v82_v6  }
  0x40   :  { %314 = vperm.xlu0 %2299, %v95_v7  }
  0x41   :  { %319 = vperm.xlu1 %2300, %v96_v8  }
  0x44   :  { %2205 = vmatmul.mubr.bf16.gmra.mxu0 %v2306_v9  ;;  %234 = vperm.xlu0 %2299, %v79_v11  }
  0x45   :  { %2208 = vmatprep.mubr.bf16.mxu0 %v2307_v10  ;;  %239 = vperm.xlu1 %2300, %v80_v12  }
  0x48   :  { %304 = vperm.xlu0 %2299, %v93_v13  }
  0x49   :  { %309 = vperm.xlu1 %2300, %v94_v14   ;;  %v2788_v14 = vld [vmem:[%s3474_s4 + $0x4] ss:$8 sps:$4 sm:$0xff]  }
  0x4c   :  { %2209 = vmatmul.mubr.bf16.gmra.mxu0 %v2308_v15  ;;  %224 = vperm.xlu0 %2299, %v77_v17   ;;  %v2322_v15 = vld [vmem:[%s3474_s4 + $0x54] ss:$8 sps:$4 sm:$0xff]  }
  0x4d   :  { %2212 = vmatprep.mubr.bf16.mxu0 %v2309_v16  ;;  %229 = vperm.xlu1 %2300, %v78_v18  }
  0x4e   :  { %1079 = vmatprep.mubr.bf16.mxu1 %v2322_v15 }
  0x50   :  { %839 = vperm.xlu0 %2299, %v171_v19  }
  0x51   :  { %844 = vperm.xlu1 %2300, %v172_v20  }
  0x54   :  { %2213 = vmatmul.mubr.bf16.gmra.mxu0 %v2310_v21  ;;  %759 = vperm.xlu0 %2299, %v155_v23  }
  0x55   :  { %2216 = vmatprep.mubr.bf16.mxu0 %v2311_v22  ;;  %764 = vperm.xlu1 %2300, %v156_v24  }
  0x58   :  { %829 = vperm.xlu0 %2299, %v169_v25  }
  0x59   :  { %834 = vperm.xlu1 %2300, %v170_v26  }
  0x5c   :  { %2217 = vmatmul.mubr.bf16.gmra.mxu0 %v2312_v27  ;;  %749 = vperm.xlu0 %2299, %v153_v29  }
  0x5d   :  { %2220 = vmatprep.mubr.bf16.mxu0 %v2313_v28  ;;  %754 = vperm.xlu1 %2300, %v154_v30  }
  0x60   :  { %819 = vperm.xlu0 %2299, %v167_v31  }
  0x61   :  { %824 = vperm.xlu1 %2300, %v168_v32  }
  0x64   :  { %2221 = vmatmul.mubr.bf16.gmra.mxu0 %v2314_v33  ;;  %739 = vperm.xlu0 %2299, %v151_v35  }
  0x65   :  { %2224 = vmatprep.mubr.bf16.mxu0 %v2315_v34  ;;  %744 = vperm.xlu1 %2300, %v152_v36  }
  0x68   :  { %809 = vperm.xlu0 %2299, %v165_v37  }
  0x69   :  { %814 = vperm.xlu1 %2300, %v166_v38  }
  0x6c   :  { %2225 = vmatmul.mubr.bf16.gmra.mxu0 %v2316_v39  ;;  %729 = vperm.xlu0 %2299, %v149_v40  }
  0x6d   :  { %734 = vperm.xlu1 %2300, %v150_v41   ;;  %1039 = vmatprep.mubr.bf16.mxu0 %v2788_v14 }
  0x70   :  { %799 = vperm.xlu0 %2299, %v163_v42  }
  0x71   :  { %804 = vperm.xlu1 %2300, %v164_v43  }
  0x74   :  { %719 = vperm.xlu0 %2299, %v147_v44  }
  0x75   :  { %724 = vperm.xlu1 %2300, %v148_v45  }
  0x78   :  { %789 = vperm.xlu0 %2299, %v161_v46  }
  0x79   :  { %794 = vperm.xlu1 %2300, %v162_v47  }
  0x7c   :  { %709 = vperm.xlu0 %2299, %v145_v48  }
  0x7d   :  { %714 = vperm.xlu1 %2300, %v146_v49  }
  0x80   :  { %779 = vperm.xlu0 %2299, %v159_v50  }
  0x81   :  { %784 = vperm.xlu1 %2300, %v160_v51  }
  0x84   :  { %699 = vperm.xlu0 %2299, %v143_v52  }
  0x85   :  { %704 = vperm.xlu1 %2300, %v144_v53  }
  0x88   :  { %769 = vperm.xlu0 %2299, %v157_v54  }
  0x89   :  { %774 = vperm.xlu1 %2300, %v158_v55  }
  0x8b   :  { %v2747_v59 = vpop.permute.xlu0 %374 }
  0x8c   :  { %689 = vperm.xlu0 %2299, %v141_v56   ;;  %3566 = vst [vmem:[#allocation8_spill] sm:$0xff] %v2747_v59  ;;  %v2749_v60 = vpop.permute.xlu1 %294 }
  0x8d   :  { %694 = vperm.xlu1 %2300, %v142_v57   ;;  %3567 = vst [vmem:[#allocation9_spill] sm:$0xff] %v2749_v60 }
  0x8f   :  { %v2751_v61 = vpop.permute.xlu0 %379 }
  0x90   :  { %1218 = vperm.xlu0 %2299, %v174_v58   ;;  %3568 = vst [vmem:[#allocation10_spill] sm:$0xff] %v2751_v61  ;;  %v2753_v62 = vpop.permute.xlu1 %299 }
  0x91   :  { %3569 = vst [vmem:[#allocation11_spill] sm:$0xff] %v2753_v62 }
  0x93   :  { %v2755_v63 = vpop.permute.xlu0 %364 }
  0x94   :  { %3570 = vst [vmem:[#allocation12_spill] sm:$0xff] %v2755_v63  ;;  %v2757_v0 = vpop.permute.xlu1 %369 }
  0x95   :  { %3571 = vst [vmem:[#allocation13_spill] sm:$0xff] %v2757_v0 }
  0x97   :  { %v2759_v1 = vpop.permute.xlu0 %284 }
  0x98   :  { %3572 = vst [vmem:[#allocation14_spill] sm:$0xff] %v2759_v1  ;;  %v2761_v2 = vpop.permute.xlu1 %289 }
  0x99   :  { %3573 = vst [vmem:[#allocation15_spill] sm:$0xff] %v2761_v2 }
  0x9b   :  { %v2763_v3 = vpop.permute.xlu0 %354 }
  0x9c   :  { %3574 = vst [vmem:[#allocation16_spill] sm:$0xff] %v2763_v3  ;;  %v2765_v4 = vpop.permute.xlu1 %359 }
  0x9d   :  { %3575 = vst [vmem:[#allocation17_spill] sm:$0xff] %v2765_v4 }
  0x9f   :  { %v2767_v5 = vpop.permute.xlu0 %274 }
  0xa0   :  { %3576 = vst [vmem:[#allocation18_spill] sm:$0xff] %v2767_v5  ;;  %v2769_v6 = vpop.permute.xlu1 %279 }
  0xa1   :  { %3577 = vst [vmem:[#allocation19_spill] sm:$0xff] %v2769_v6 }
  0xa3   :  { %v2771_v7 = vpop.permute.xlu0 %344 }
  0xa4   :  { %3578 = vst [vmem:[#allocation20_spill] sm:$0xff] %v2771_v7  ;;  %v2773_v8 = vpop.permute.xlu1 %349 }
  0xa5   :  { %3579 = vst [vmem:[#allocation21_spill] sm:$0xff] %v2773_v8 }
  0xa7   :  { %v2775_v9 = vpop.permute.xlu0 %264 }
  0xa8   :  { %3580 = vst [vmem:[#allocation22_spill] sm:$0xff] %v2775_v9  ;;  %v2777_v10 = vpop.permute.xlu1 %269 }
  0xa9   :  { %3581 = vst [vmem:[#allocation23_spill] sm:$0xff] %v2777_v10 }
  0xab   :  { %v2779_v11 = vpop.permute.xlu0 %334 }
  0xac   :  { %3582 = vst [vmem:[#allocation24_spill] sm:$0xff] %v2779_v11  ;;  %v2781_v12 = vpop.permute.xlu1 %339 }
  0xad   :  { %3583 = vst [vmem:[#allocation25_spill] sm:$0xff] %v2781_v12 }
  0xaf   :  { %v2783_v13 = vpop.permute.xlu0 %254 }
  0xb0   :  { %3584 = vst [vmem:[#allocation26_spill] sm:$0xff] %v2783_v13  ;;  %v2793_v16 = vpop.permute.xlu1 %259 }
  0xb1   :  { %3585 = vst [vmem:[#allocation27_spill] sm:$0xff] %v2793_v16 }
  0xb3   :  { %v2796_v17 = vpop.permute.xlu0 %324 }
  0xb4   :  { %3586 = vst [vmem:[#allocation28_spill] sm:$0xff] %v2796_v17  ;;  %v2798_v18 = vpop.permute.xlu1 %329 }
  0xb5   :  { %3587 = vst [vmem:[#allocation29_spill] sm:$0xff] %v2798_v18 }
  0xb7   :  { %v2800_v19 = vpop.permute.xlu0 %244 }
  0xb8   :  { %3588 = vst [vmem:[#allocation30_spill] sm:$0xff] %v2800_v19  ;;  %v2802_v20 = vpop.permute.xlu1 %249 }
  0xb9   :  { %3589 = vst [vmem:[#allocation31_spill] sm:$0xff] %v2802_v20 }
  0xbb   :  { %v2804_v21 = vpop.permute.xlu0 %314 }
  0xbc   :  { %3590 = vst [vmem:[#allocation32_spill] sm:$0xff] %v2804_v21  ;;  %v2806_v22 = vpop.permute.xlu1 %319 }
  0xbd   :  { %3591 = vst [vmem:[#allocation33_spill] sm:$0xff] %v2806_v22 }
  0xbf   :  { %v2808_v23 = vpop.permute.xlu0 %234 }
  0xc0   :  { %3592 = vst [vmem:[#allocation34_spill] sm:$0xff] %v2808_v23  ;;  %v2810_v24 = vpop.permute.xlu1 %239 }
  0xc1   :  { %3593 = vst [vmem:[#allocation35_spill] sm:$0xff] %v2810_v24 }
  0xc3   :  { %v2812_v25 = vpop.permute.xlu0 %304 }
  0xc4   :  { %3594 = vst [vmem:[#allocation36_spill] sm:$0xff] %v2812_v25  ;;  %v2814_v26 = vpop.permute.xlu1 %309 }
  0xc5   :  { %3595 = vst [vmem:[#allocation37_spill] sm:$0xff] %v2814_v26 }
  0xc7   :  { %v2817_v30 = vpop.permute.xlu0 %224 }
  0xc8   :  { %3596 = vst [vmem:[#allocation38_spill] sm:$0xff] %v2817_v30  ;;  %v2821_v34 = vpop.permute.xlu1 %229 }
  0xc9   :  { %3597 = vst [vmem:[#allocation39_spill] sm:$0xff] %v2821_v34 }
  0xf4   :  { %v2198_v27 = vpop.f32.mrf.mxu0 }
  0xf5   :  { %v521_v29 = vadd.f32 %v2198_v27, %v2808_v23 }
  0xf6   :  { %v512_v28 = vpop.f32.mrf.mxu0 }
  0xf7   :  { %v513_v32 = vadd.f32 %v512_v28, %v2817_v30  ;;  %v641_v36 = vmax.f32 %v521_v29, 0.0 }
  0xf8   :  { %v2199_v31 = vpop.f32.mrf.mxu0 }
  0xf9   :  { %v524_v33 = vadd.f32 %v2199_v31, %v2810_v24  ;;  %v639_v40 = vmax.f32 %v513_v32, 0.0 }
  0xfa   :  { %v515_v35 = vpop.f32.mrf.mxu0 }
  0xfb   :  { %v642_v37 = vmax.f32 %v524_v33, 0.0  ;;  %v516_v38 = vadd.f32 %v515_v35, %v2821_v34 }
  0xfc   :  { %v2202_v39 = vpop.f32.mrf.mxu0 }
  0xfd   :  { %v2824_v41 = vpack.c.bf16 %v642_v37, %v641_v36  ;;  %v640_v42 = vmax.f32 %v516_v38, 0.0  ;;  %v537_v45 = vadd.f32 %v2202_v39, %v2783_v13 }
  0xfe   :  { %v528_v43 = vpop.f32.mrf.mxu0 }
  0xff   :  { %v2826_v44 = vpack.c.bf16 %v640_v42, %v639_v40  ;;  %v529_v47 = vadd.f32 %v528_v43, %v2800_v19  ;;  %v645_v50 = vmax.f32 %v537_v45, 0.0 }
 0x100   :  { %v2203_v46 = vpop.f32.mrf.mxu0 }
 0x101   :  { %v540_v48 = vadd.f32 %v2203_v46, %v2793_v16  ;;  %v643_v54 = vmax.f32 %v529_v47, 0.0 }
 0x102   :  { %v531_v49 = vpop.f32.mrf.mxu0 }
 0x103   :  { %v646_v51 = vmax.f32 %v540_v48, 0.0  ;;  %v532_v52 = vadd.f32 %v531_v49, %v2802_v20 }
 0x104   :  { %v2206_v53 = vpop.f32.mrf.mxu0 }
 0x105   :  { %v2832_v55 = vpack.c.bf16 %v646_v51, %v645_v50  ;;  %v644_v56 = vmax.f32 %v532_v52, 0.0 }
 0x106   :  { %v2834_v57 = vpop.f32.mrf.mxu0 }
 0x107   :  { %v2836_v58 = vpack.c.bf16 %v644_v56, %v643_v54 }
 0x108   :  { %v2207_v15 = vpop.f32.mrf.mxu0 }
 0x10a   :  { %v547_v27 = vpop.f32.mrf.mxu0 }
 0x10c   :  { %v2210_v28 = vpop.f32.mrf.mxu0 }
 0x10d   :  { %v569_v52 = vadd.f32 %v2210_v28, %v2749_v60 }
 0x10e   :  { %v560_v29 = vpop.f32.mrf.mxu0 }
 0x110   :  { %v2211_v31 = vpop.f32.mrf.mxu0 }
 0x111   :  { %v572_v49 = vadd.f32 %v2211_v31, %v2753_v62  ;;  %v653_v62 = vmax.f32 %v569_v52, 0.0 }
 0x112   :  { %v563_v32 = vpop.f32.mrf.mxu0 }
 0x113   :  { %v654_v16 = vmax.f32 %v572_v49, 0.0  ;;  %v564_v19 = vadd.f32 %v563_v32, %v2761_v2 }
 0x114   :  { %v2838_v33 = vpop.f32.mrf.mxu0 }
 0x115   :  { %v678_v49 = vpack.c.bf16 %v654_v16, %v653_v62  ;;  %v548_v62 = vadd.f32 %v547_v27, %v2777_v10 }
 0x116   :  { %v2840_v35 = vpop.f32.mrf.mxu0 }
 0x118   :  { %v2842_v36 = vpop.f32.mrf.mxu0 }
 0x11a   :  { %v2844_v37 = vpop.f32.mrf.mxu0 }
 0x11c   :  { %v2218_v38 = vpop.f32.mrf.mxu0 }
 0x11e   :  { %v2846_v39 = vpop.f32.mrf.mxu0 }
 0x120   :  { %v2219_v40 = vpop.f32.mrf.mxu0 }
 0x122   :  { %v595_v42 = vpop.f32.mrf.mxu0 }
 0x124   :  { %v2222_v43 = vpop.f32.mrf.mxu0 }
 0x125   :  { %v617_v28 = vadd.f32 %v2222_v43, %v2763_v3 }
 0x126   :  { %v608_v45 = vpop.f32.mrf.mxu0 }
 0x127   :  { %v609_v43 = vadd.f32 %v608_v45, %v2771_v7 }
 0x128   :  { %v2223_v46 = vpop.f32.mrf.mxu0 }
 0x129   :  { %v620_v34 = vadd.f32 %v2223_v46, %v2765_v4 }
 0x12a   :  { %v611_v47 = vpop.f32.mrf.mxu0 }
 0x12b   :  { %v666_v32 = vmax.f32 %v620_v34, 0.0  ;;  %v612_v2 = vadd.f32 %v611_v47, %v2773_v8  ;;  %v648_v47 = vmax.f32 %v548_v62, 0.0  ;;  %v2952_v62 = vld [vmem:[%s3474_s4 + $0x84] ss:$8 sps:$4 sm:$0xff]  }
 0x12c   :  { %v2226_v48 = vpop.f32.mrf.mxu0  ;;  %3609 = vst [vmem:[#allocation51_spill] sm:$0xff] %v2952_v62 }
 0x12d   :  { %v633_v51 = vadd.f32 %v2226_v48, %v2747_v59  ;;  %v561_v48 = vadd.f32 %v560_v29, %v2759_v1  ;;  %v665_v29 = vmax.f32 %v617_v28, 0.0 }
 0x12e   :  { %v624_v50 = vpop.f32.mrf.mxu0 }
 0x12f   :  { %v625_v56 = vadd.f32 %v624_v50, %v2755_v63  ;;  %v669_v24 = vmax.f32 %v633_v51, 0.0 }
 0x130   :  { %v2227_v54 = vpop.f32.mrf.mxu0 }
 0x131   :  { %v636_v20 = vadd.f32 %v2227_v54, %v2751_v61  ;;  %v667_v60 = vmax.f32 %v625_v56, 0.0  ;;  %v556_v54 = vadd.f32 %v2207_v15, %v2769_v6  ;;  %v652_v61 = vmax.f32 %v564_v19, 0.0 }
 0x132   :  { %v627_v13 = vpop.f32.mrf.mxu0  ;;  %v604_v19 = vadd.f32 %v2219_v40, %v2781_v12  ;;  %v663_v15 = vmax.f32 %v609_v43, 0.0  ;;  %v2942_v43 = vld [vmem:[%s3474_s4 + $0x70] ss:$8 sps:$4 sm:$0xff]  }
 0x133   :  { %v670_v30 = vmax.f32 %v636_v20, 0.0  ;;  %v628_v31 = vadd.f32 %v627_v13, %v2757_v0  ;;  %v553_v13 = vadd.f32 %v2206_v53, %v2767_v5  ;;  %v651_v20 = vmax.f32 %v561_v48, 0.0  ;;  %3607 = vst [vmem:[#allocation49_spill] sm:$0xff] %v2942_v43 }
 0x134   :  { %v601_v53 = vadd.f32 %v2218_v38, %v2779_v11  ;;  %v662_v51 = vmax.f32 %v604_v19, 0.0  ;;  %v588_v38 = vadd.f32 %v2842_v36, %v2806_v22  ;;  %v2966_v19 = vld [vmem:[%s3474_s4 + $0x80] ss:$8 sps:$4 sm:$0xff]  }
 0x135   :  { %v686_v59 = vpack.c.bf16 %v670_v30, %v669_v24  ;;  %v668_v50 = vmax.f32 %v628_v31, 0.0  ;;  %v650_v24 = vmax.f32 %v556_v54, 0.0  ;;  %v677_v16 = vpack.c.bf16 %v652_v61, %v651_v20  ;;  %v2928_v20 = vld [vmem:[%s3474_s4 + $0x74] ss:$8 sps:$4 sm:$0xff]   ;;  %3611 = vst [vmem:[#allocation53_spill] sm:$0xff] %v2966_v19 }
 0x136   :  { %v684_v30 = vpack.c.bf16 %v666_v32, %v665_v29  ;;  %v649_v34 = vmax.f32 %v553_v13, 0.0  ;;  %v596_v61 = vadd.f32 %v595_v42, %v2798_v18  ;;  %v585_v42 = vadd.f32 %v2838_v33, %v2804_v21  ;;  %v2923_v13 = vld [vmem:[%s3474_s4 + $0x24] ss:$8 sps:$4 sm:$0xff]   ;;  %3605 = vst [vmem:[#allocation47_spill] sm:$0xff] %v2928_v20  ;;  %v2937_v29 = vld [vmem:[%s3474_s4 + $0x20] ss:$8 sps:$4 sm:$0xff]  }
 0x137   :  { %v685_v46 = vpack.c.bf16 %v668_v50, %v667_v60  ;;  %1888 = vmatprep.subr.bf16.mxu0 %v686_v59  ;;  %2276 = vmatprep.subr.bf16.mxu1 %v686_v59  ;;  %v664_v60 = vmax.f32 %v612_v2, 0.0  ;;  %v545_v59 = vadd.f32 %v2834_v57, %v2775_v9  ;;  %v661_v2 = vmax.f32 %v601_v53, 0.0  ;;  %3604 = vst [vmem:[#allocation46_spill] sm:$0xff] %v2923_v13  ;;  %v2995_v53 = vld [vmem:[%s3474_s4 + $0xa4] ss:$8 sps:$4 sm:$0xff]  }
 0x138   :  { %1889 = vmatpush3.bf16.msra.mxu0 %v678_v49  ;;  %2284 = vmatpush3.bf16.msra.mxu1 %v678_v49  ;;  %v676_v45 = vpack.c.bf16 %v650_v24, %v649_v34  ;;  %v593_v57 = vadd.f32 %v2846_v39, %v2796_v17  ;;  %v660_v31 = vmax.f32 %v596_v61, 0.0  ;;  %v658_v28 = vmax.f32 %v588_v38, 0.0  ;;  %3606 = vst [vmem:[#allocation48_spill] sm:$0xff] %v2937_v29  ;;  %v2947_v24 = vld [vmem:[%s3474_s4 + $0x34] ss:$8 sps:$4 sm:$0xff]  }
 0x139   :  { %1890 = vmatprep.subr.bf16.mxu0 %v685_v46  ;;  %2277 = vmatprep.subr.bf16.mxu1 %v685_v46  ;;  %v683_v27 = vpack.c.bf16 %v664_v60, %v663_v15  ;;  %v647_v40 = vmax.f32 %v545_v59, 0.0  ;;  %v682_v56 = vpack.c.bf16 %v662_v51, %v661_v2  ;;  %v580_v39 = vadd.f32 %v2844_v37, %v2814_v26  ;;  %v2918_v46 = vld [vmem:[%s3474_s4 + $0x60] ss:$8 sps:$4 sm:$0xff]   ;;  %v2976_v60 = vld [vmem:[%s3474_s4 + $0x94] ss:$8 sps:$4 sm:$0xff]  }
 0x13a   :  { %v659_v48 = vmax.f32 %v593_v57, 0.0  ;;  %v657_v36 = vmax.f32 %v585_v42, 0.0  ;;  %v577_v54 = vadd.f32 %v2840_v35, %v2812_v25  ;;  %v2892_v35 = vld [vmem:[%s3474_s4 + $0x50] ss:$8 sps:$4 sm:$0xff]   ;;  %3603 = vst [vmem:[#allocation45_spill] sm:$0xff] %v2918_v46  ;;  %3608 = vst [vmem:[#allocation50_spill] sm:$0xff] %v2947_v24 }
 0x13b   :  { %v675_v52 = vpack.c.bf16 %v648_v47, %v647_v40  ;;  %v656_v33 = vmax.f32 %v580_v39, 0.0  ;;  %3599 = vst [vmem:[#allocation41_spill] sm:$0xff] %v2892_v35  ;;  %3613 = vst [vmem:[#allocation55_spill] sm:$0xff] %v2976_v60  ;;  %v2985_v34 = vld [vmem:[%s3474_s4 + $0x40] ss:$8 sps:$4 sm:$0xff]  }
 0x13c   :  { %1891 = vmatpush3.bf16.msra.mxu0 %v677_v16  ;;  %2285 = vmatpush3.bf16.msra.mxu1 %v677_v16  ;;  %v681_v50 = vpack.c.bf16 %v660_v31, %v659_v48  ;;  %v680_v49 = vpack.c.bf16 %v658_v28, %v657_v36  ;;  %v655_v32 = vmax.f32 %v577_v54, 0.0  ;;  %v2961_v16 = vld [vmem:[%s3474_s4 + $0x30] ss:$8 sps:$4 sm:$0xff]   ;;  %3614 = vst [vmem:[#allocation56_spill] sm:$0xff] %v2985_v34  ;;  %3616 = vst [vmem:[#allocation58_spill] sm:$0xff] %v2995_v53  ;;  %v3069_v31 = vpop.permute.xlu1 %844 }
 0x13d   :  { %1892 = vmatprep.subr.bf16.mxu0 %v684_v30  ;;  %2278 = vmatprep.subr.bf16.mxu1 %v684_v30  ;;  %3610 = vst [vmem:[#allocation52_spill] sm:$0xff] %v2961_v16  ;;  %v2971_v30 = vld [vmem:[%s3474_s4 + $0x44] ss:$8 sps:$4 sm:$0xff]   ;;  %v2990_v59 = vld [vmem:[%s3474_s4 + $0x90] ss:$8 sps:$4 sm:$0xff]  }
 0x13e   :  { %v679_v37 = vpack.c.bf16 %v656_v33, %v655_v32  ;;  %3612 = vst [vmem:[#allocation54_spill] sm:$0xff] %v2971_v30  ;;  %3615 = vst [vmem:[#allocation57_spill] sm:$0xff] %v2990_v59  ;;  %v3003_v15 = vld [vmem:[%s3474_s4 + $0xa0] ss:$8 sps:$4 sm:$0xff]   ;;  %v3015_v47 = vld [vmem:[%s3474_s4 + $0xb0] ss:$8 sps:$4 sm:$0xff]  }
 0x13f   :  { %3617 = vst [vmem:[#allocation59_spill] sm:$0xff] %v3003_v15  ;;  %3619 = vst [vmem:[#allocation61_spill] sm:$0xff] %v3015_v47  ;;  %v3020_v51 = vld [vmem:[%s3474_s4 + $0xc4] ss:$8 sps:$4 sm:$0xff]   ;;  %v3027_v61 = vld [vmem:[%s3474_s4 + $0xc0] ss:$8 sps:$4 sm:$0xff]  }
 0x140   :  { %1893 = vmatpush3.bf16.msra.mxu0 %v676_v45  ;;  %2286 = vmatpush3.bf16.msra.mxu1 %v676_v45  ;;  %v3008_v45 = vld [vmem:[%s3474_s4 + $0xb4] ss:$8 sps:$4 sm:$0xff]   ;;  %3620 = vst [vmem:[#allocation62_spill] sm:$0xff] %v3020_v51  ;;  %3621 = vst [vmem:[#allocation63_spill] sm:$0xff] %v3027_v61  ;;  %v3039_v40 = vld [vmem:[%s3474_s4 + $0xd0] ss:$8 sps:$4 sm:$0xff]   ;;  %v3073_v48 = vpop.permute.xlu1 %764 }
 0x141   :  { %1894 = vmatprep.subr.bf16.mxu0 %v683_v27  ;;  %2279 = vmatprep.subr.bf16.mxu1 %v683_v27  ;;  %3618 = vst [vmem:[#allocation60_spill] sm:$0xff] %v3008_v45  ;;  %v3032_v27 = vld [vmem:[%s3474_s4 + $0xd4] ss:$8 sps:$4 sm:$0xff]   ;;  %3623 = vst [vmem:[#allocation65_spill] sm:$0xff] %v3039_v40  ;;  %v3044_v2 = vld [vmem:[%s3474_s4 + $0xe4] ss:$8 sps:$4 sm:$0xff]  }
 0x142   :  { %3622 = vst [vmem:[#allocation64_spill] sm:$0xff] %v3032_v27  ;;  %3624 = vst [vmem:[#allocation66_spill] sm:$0xff] %v3044_v2  ;;  %v3051_v57 = vld [vmem:[%s3474_s4 + $0xe0] ss:$8 sps:$4 sm:$0xff]   ;;  %v3063_v38 = vld [vmem:[%s3474_s4 + $0xf0] ss:$8 sps:$4 sm:$0xff]  }
 0x143   :  { %3625 = vst [vmem:[#allocation67_spill] sm:$0xff] %v3051_v57  ;;  %3627 = vst [vmem:[#allocation69_spill] sm:$0xff] %v3063_v38 }
 0x144   :  { %1895 = vmatpush3.bf16.msra.mxu0 %v675_v52  ;;  %2287 = vmatpush3.bf16.msra.mxu1 %v675_v52  ;;  %v3056_v52 = vld [vmem:[%s3474_s4 + $0xf4] ss:$8 sps:$4 sm:$0xff]   ;;  %3629 = vst [vmem:[#allocation71_spill] sm:$0xff] %v3073_v48  ;;  %v3077_v39 = vpop.permute.xlu1 %834 }
 0x145   :  { %1896 = vmatprep.subr.bf16.mxu0 %v682_v56  ;;  %2280 = vmatprep.subr.bf16.mxu1 %v682_v56  ;;  %3626 = vst [vmem:[#allocation68_spill] sm:$0xff] %v3056_v52  ;;  %v3067_v56 = vpop.permute.xlu0 %839 }
 0x148   :  { %1897 = vmatpush3.bf16.msra.mxu0 %v2832_v55  ;;  %2288 = vmatpush3.bf16.msra.mxu1 %v2832_v55  ;;  %v2887_v55 = vld [vmem:[%s3474_s4] ss:$8 sps:$4 sm:$0xff]   ;;  %v3081_v36 = vpop.permute.xlu1 %754 }
 0x149   :  { %1898 = vmatprep.subr.bf16.mxu0 %v681_v50  ;;  %2281 = vmatprep.subr.bf16.mxu1 %v681_v50  ;;  %3598 = vst [vmem:[#allocation40_spill] sm:$0xff] %v2887_v55  ;;  %v3071_v42 = vpop.permute.xlu0 %759  ;;  %3631 = vst [vmem:[#allocation73_spill] sm:$0xff] %v3081_v36 }
 0x14a   :  { %3628 = vst [vmem:[#allocation70_spill] sm:$0xff] %v3071_v42 }
 0x14c   :  { %1899 = vmatpush3.bf16.msra.mxu0 %v2836_v58  ;;  %2289 = vmatpush3.bf16.msra.mxu1 %v2836_v58  ;;  %v2904_v58 = vld [vmem:[%s3474_s4 + $0x64] ss:$8 sps:$4 sm:$0xff]  }
 0x14d   :  { %1900 = vmatprep.subr.bf16.mxu0 %v680_v49  ;;  %2282 = vmatprep.subr.bf16.mxu1 %v680_v49  ;;  %3601 = vst [vmem:[#allocation43_spill] sm:$0xff] %v2904_v58  ;;  %v3075_v28 = vpop.permute.xlu0 %829  ;;  %v3085_v49 = vpop.permute.xlu1 %824 }
 0x150   :  { %1901 = vmatpush3.bf16.msra.mxu0 %v2824_v41  ;;  %2290 = vmatpush3.bf16.msra.mxu1 %v2824_v41  ;;  %v2899_v41 = vld [vmem:[%s3474_s4 + $0x14] ss:$8 sps:$4 sm:$0xff]  }
 0x151   :  { %1902 = vmatprep.subr.bf16.mxu0 %v679_v37  ;;  %2283 = vmatprep.subr.bf16.mxu1 %v679_v37  ;;  %3600 = vst [vmem:[#allocation42_spill] sm:$0xff] %v2899_v41  ;;  %v3079_v50 = vpop.permute.xlu0 %749  ;;  %v3089_v33 = vpop.permute.xlu1 %744 }
 0x152   :  { %3630 = vst [vmem:[#allocation72_spill] sm:$0xff] %v3079_v50  ;;  %3634 = vst [vmem:[#allocation76_spill] sm:$0xff] %v3089_v33 }
 0x154   :  { %1903 = vmatpush3.bf16.msra.mxu0 %v2826_v44  ;;  %2291 = vmatpush3.bf16.msra.mxu1 %v2826_v44  ;;  %v2913_v44 = vld [vmem:[%s3474_s4 + $0x10] ss:$8 sps:$4 sm:$0xff]  }
 0x155   :  { %3602 = vst [vmem:[#allocation44_spill] sm:$0xff] %v2913_v44  ;;  %v3083_v54 = vpop.permute.xlu0 %819  ;;  %v3093_v37 = vpop.permute.xlu1 %814 }
 0x156   :  { %3632 = vst [vmem:[#allocation74_spill] sm:$0xff] %v3083_v54  ;;  %3636 = vst [vmem:[#allocation78_spill] sm:$0xff] %v3093_v37 }
 0x157   :  { %1040 = vmatmul.mubr.bf16.vlgmr.msra.gmra.mxu0 %v2887_v55  ;;  %1080 = vmatmul.mubr.bf16.vlgmr.msra.gmra.mxu1 %v2892_v35 }
 0x158   :  { %1047 = vmatprep.mubr.bf16.mxu0 %v2899_v41  ;;  %1087 = vmatprep.mubr.bf16.mxu1 %v2904_v58 }
 0x15f   :  { %1048 = vmatmul.mubr.bf16.gmra.mxu0 %v2913_v44  ;;  %1088 = vmatmul.mubr.bf16.gmra.mxu1 %v2918_v46 }
 0x160   :  { %1055 = vmatprep.mubr.bf16.mxu0 %v2923_v13  ;;  %1095 = vmatprep.mubr.bf16.mxu1 %v2928_v20 }
 0x167   :  { %1056 = vmatmul.mubr.bf16.gmra.mxu0 %v2937_v29  ;;  %1096 = vmatmul.mubr.bf16.gmra.mxu1 %v2942_v43 }
 0x168   :  { %1063 = vmatprep.mubr.bf16.mxu0 %v2947_v24  ;;  %1103 = vmatprep.mubr.bf16.mxu1 %v2952_v62 }
 0x16f   :  { %1064 = vmatmul.mubr.bf16.gmra.mxu0 %v2961_v16  ;;  %1104 = vmatmul.mubr.bf16.gmra.mxu1 %v2966_v19 }
 0x170   :  { %1071 = vmatprep.mubr.bf16.mxu0 %v2971_v30  ;;  %1111 = vmatprep.mubr.bf16.mxu1 %v2976_v60 }
 0x177   :  { %1072 = vmatmul.mubr.bf16.gmra.mxu0 %v2985_v34  ;;  %1112 = vmatmul.mubr.bf16.gmra.mxu1 %v2990_v59 }
 0x178   :  { %1119 = vmatprep.mubr.bf16.mxu1 %v2995_v53 }
 0x17f   :  { %1120 = vmatmul.mubr.bf16.gmra.mxu1 %v3003_v15 }
 0x180   :  { %1127 = vmatprep.mubr.bf16.mxu1 %v3008_v45 }
 0x187   :  { %1128 = vmatmul.mubr.bf16.gmra.mxu1 %v3015_v47 }
 0x188   :  { %1135 = vmatprep.mubr.bf16.mxu1 %v3020_v51 }
 0x18f   :  { %1136 = vmatmul.mubr.bf16.gmra.mxu1 %v3027_v61 }
 0x190   :  { %1143 = vmatprep.mubr.bf16.mxu1 %v3032_v27 }
 0x197   :  { %1144 = vmatmul.mubr.bf16.gmra.mxu1 %v3039_v40 }
 0x198   :  { %1151 = vmatprep.mubr.bf16.mxu1 %v3044_v2  ;;  %v3104_v2 = vld [vmem:[%s3476_s6] sm:$0xff] }
 0x199   :  { %3638 = vst [vmem:[#allocation80_spill] sm:$0xff] %v3104_v2  ;;  %v3110_v27 = vcombine.high %v3104_v2, %v3104_v2 }
 0x19b   :  { %3640 = vst [vmem:[#allocation82_spill] sm:$0xff] %v3110_v27  ;;  %1260 = vmatprep.mubr.bf16.mxu0 %v3110_v27 }
 0x19f   :  { %1152 = vmatmul.mubr.bf16.gmra.mxu1 %v3051_v57 }
 0x1a0   :  { %1159 = vmatprep.mubr.bf16.mxu1 %v3056_v52  ;;  %v3097_v52 = vpop.permute.xlu1 %734 }
 0x1a4   :  { %v3106_v40 = vpop.permute.xlu1 %804 }
 0x1a5   :  { %3639 = vst [vmem:[#allocation81_spill] sm:$0xff] %v3106_v40 }
 0x1a7   :  { %1160 = vmatmul.mubr.bf16.gmra.mxu1 %v3063_v38 }
 0x1a8   :  { %1559 = vmatprep.mubr.bf16.mxu1 %v2788_v14  ;;  %v3087_v14 = vpop.permute.xlu0 %739  ;;  %v3115_v47 = vpop.permute.xlu1 %724 }
 0x1a9   :  { %3633 = vst [vmem:[#allocation75_spill] sm:$0xff] %v3087_v14 }
 0x1ac   :  { %v3091_v32 = vpop.permute.xlu0 %809  ;;  %v3120_v43 = vpop.permute.xlu1 %794 }
 0x1ad   :  { %3635 = vst [vmem:[#allocation77_spill] sm:$0xff] %v3091_v32  ;;  %3642 = vst [vmem:[#allocation84_spill] sm:$0xff] %v3120_v43 }
 0x1b0   :  { %v3095_v38 = vpop.permute.xlu0 %729 }
 0x1b4   :  { %v3099_v57 = vpop.permute.xlu0 %799 }
 0x1b5   :  { %3637 = vst [vmem:[#allocation79_spill] sm:$0xff] %v3099_v57 }
 0x1b8   :  { %v3113_v61 = vpop.permute.xlu0 %719 }
 0x1bc   :  { %v3117_v59 = vpop.permute.xlu0 %789 }
 0x1bd   :  { %3641 = vst [vmem:[#allocation83_spill] sm:$0xff] %v3117_v59 }
 0x1c0   :  { %v3123_v16 = vpop.permute.xlu0 %709 }
 0x1c1   :  { %3643 = vst [vmem:[#allocation85_spill] sm:$0xff] %v3123_v16 }
 0x217   :  { %v1934_v51 = vpop.f32.mrf.mxu1  ;;  %v3129_v13 = vpop.f32.mrf.mxu0 }
 0x218   :  { %3646 = vst [vmem:[#allocation88_spill] sm:$0xff] %v3129_v13 }
 0x219   :  { %v1935_v45 = vpop.f32.mrf.mxu1 }
 0x21a   :  { %v1936_v15 = vadd.f32 %v1935_v45, %v1934_v51  ;;  %v3127_v51 = vpop.permute.xlu1 %714 }
 0x21b   :  { %v1937_v53 = vpop.f32.mrf.mxu1  ;;  %3645 = vst [vmem:[#allocation87_spill] sm:$0xff] %v3127_v51 }
 0x21c   :  { %v1082_v19 = vadd.f32 %v1936_v15, %v3087_v14 }
 0x21d   :  { %v1938_v60 = vpop.f32.mrf.mxu1 }
 0x21e   :  { %v1939_v62 = vadd.f32 %v1938_v60, %v1937_v53  ;;  %v1178_v35 = vmax.f32 %v1082_v19, 0.0 }
 0x21f   :  { %v1940_v20 = vpop.f32.mrf.mxu1 }
 0x220   :  { %v1085_v46 = vadd.f32 %v1939_v62, %v3089_v33  ;;  %v3133_v33 = vpop.permute.xlu0 %779 }
 0x221   :  { %v1941_v58 = vpop.f32.mrf.mxu1  ;;  %3647 = vst [vmem:[#allocation89_spill] sm:$0xff] %v3133_v33 }
 0x222   :  { %v1179_v34 = vmax.f32 %v1085_v46, 0.0  ;;  %v1942_v30 = vadd.f32 %v1941_v58, %v1940_v20  ;;  %v3135_v58 = vpop.f32.mrf.mxu0 }
 0x223   :  { %v1943_v24 = vpop.f32.mrf.mxu1  ;;  %3648 = vst [vmem:[#allocation90_spill] sm:$0xff] %v3135_v58 }
 0x224   :  { %v3125_v45 = vpack.c.bf16 %v1179_v34, %v1178_v35  ;;  %v1090_v60 = vadd.f32 %v1942_v30, %v3079_v50  ;;  %v3137_v34 = vpop.permute.xlu1 %784  ;;  %v3141_v55 = vpop.f32.mrf.mxu0 }
 0x225   :  { %v1944_v29 = vpop.f32.mrf.mxu1  ;;  %3649 = vst [vmem:[#allocation91_spill] sm:$0xff] %v3137_v34  ;;  %3650 = vst [vmem:[#allocation92_spill] sm:$0xff] %v3141_v55  ;;  %v3144_v30 = vpop.permute.xlu0 %699 }
 0x226   :  { %3644 = vst [vmem:[#allocation86_spill] sm:$0xff] %v3125_v45  ;;  %v1945_v53 = vadd.f32 %v1944_v29, %v1943_v24  ;;  %v1180_v20 = vmax.f32 %v1090_v60, 0.0  ;;  %3651 = vst [vmem:[#allocation93_spill] sm:$0xff] %v3144_v30 }
 0x227   :  { %v1946_v15 = vpop.f32.mrf.mxu1 }
 0x228   :  { %v1093_v62 = vadd.f32 %v1945_v53, %v3081_v36  ;;  %v3147_v50 = vpop.permute.xlu1 %704 }
 0x229   :  { %v1947_v46 = vpop.f32.mrf.mxu1  ;;  %3652 = vst [vmem:[#allocation94_spill] sm:$0xff] %v3147_v50  ;;  %v3153_v26 = vpop.permute.xlu0 %769 }
 0x22a   :  { %v1181_v19 = vmax.f32 %v1093_v62, 0.0  ;;  %v1948_v35 = vadd.f32 %v1947_v46, %v1946_v15  ;;  %v3149_v15 = vpop.f32.mrf.mxu0  ;;  %3654 = vst [vmem:[#allocation96_spill] sm:$0xff] %v3153_v26 }
 0x22b   :  { %v1949_v14 = vpop.f32.mrf.mxu1  ;;  %3653 = vst [vmem:[#allocation95_spill] sm:$0xff] %v3149_v15 }
 0x22c   :  { %v3139_v44 = vpack.c.bf16 %v1181_v19, %v1180_v20  ;;  %v1098_v29 = vadd.f32 %v1948_v35, %v3071_v42 }
 0x22d   :  { %v1950_v41 = vpop.f32.mrf.mxu1 }
 0x22e   :  { %v1951_v24 = vadd.f32 %v1950_v41, %v1949_v14  ;;  %v1182_v62 = vmax.f32 %v1098_v29, 0.0  ;;  %v3155_v41 = vpop.f32.mrf.mxu0 }
 0x22f   :  { %v1952_v53 = vpop.f32.mrf.mxu1  ;;  %3655 = vst [vmem:[#allocation97_spill] sm:$0xff] %v3155_v41 }
 0x230   :  { %v1101_v36 = vadd.f32 %v1951_v24, %v3073_v48  ;;  %v3158_v24 = vpop.permute.xlu1 %774  ;;  %v3161_v29 = vpop.f32.mrf.mxu0 }
 0x231   :  { %v1953_v60 = vpop.f32.mrf.mxu1  ;;  %3656 = vst [vmem:[#allocation98_spill] sm:$0xff] %v3158_v24  ;;  %3657 = vst [vmem:[#allocation99_spill] sm:$0xff] %v3161_v29 }
 0x232   :  { %v1183_v46 = vmax.f32 %v1101_v36, 0.0  ;;  %v1954_v20 = vadd.f32 %v1953_v60, %v1952_v53  ;;  %v3165_v18 = vpop.f32.mrf.mxu0 }
 0x233   :  { %v1955_v19 = vpop.f32.mrf.mxu1  ;;  %3659 = vst [vmem:[#allocation101_spill] sm:$0xff] %v3165_v18 }
 0x234   :  { %v3151_v25 = vpack.c.bf16 %v1183_v46, %v1182_v62  ;;  %v1106_v14 = vadd.f32 %v1954_v20, %v3153_v26 }
 0x235   :  { %v1956_v35 = vpop.f32.mrf.mxu1 }
 0x236   :  { %v1957_v42 = vadd.f32 %v1956_v35, %v1955_v19  ;;  %v1184_v36 = vmax.f32 %v1106_v14, 0.0 }
 0x237   :  { %v1958_v48 = vpop.f32.mrf.mxu1 }
 0x238   :  { %v1109_v21 = vadd.f32 %v1957_v42, %v3158_v24  ;;  %v3173_v24 = vpop.f32.mrf.mxu0 }
 0x239   :  { %v1959_v22 = vpop.f32.mrf.mxu1  ;;  %3660 = vst [vmem:[#allocation102_spill] sm:$0xff] %v3173_v24 }
 0x23a   :  { %v1185_v53 = vmax.f32 %v1109_v21, 0.0  ;;  %v1960_v60 = vadd.f32 %v1959_v22, %v1958_v48 }
 0x23b   :  { %v1961_v62 = vpop.f32.mrf.mxu1 }
 0x23c   :  { %v3163_v46 = vpack.c.bf16 %v1185_v53, %v1184_v36  ;;  %v1114_v20 = vadd.f32 %v1960_v60, %v3133_v33  ;;  %v3181_v53 = vpop.f32.mrf.mxu0 }
 0x23d   :  { %v1962_v17 = vpop.f32.mrf.mxu1 }
 0x23e   :  { %3658 = vst [vmem:[#allocation100_spill] sm:$0xff] %v3163_v46  ;;  %v1963_v19 = vadd.f32 %v1962_v17, %v1961_v62  ;;  %v1186_v14 = vmax.f32 %v1114_v20, 0.0  ;;  %v3183_v62 = vpop.f32.mrf.mxu0 }
 0x23f   :  { %v3168_v35 = vpop.f32.mrf.mxu1 }
 0x240   :  { %v1117_v26 = vadd.f32 %v1963_v19, %v3137_v34  ;;  %v3185_v34 = vpop.f32.mrf.mxu0 }
 0x241   :  { %v3171_v42 = vpop.f32.mrf.mxu1 }
 0x242   :  { %v1187_v21 = vmax.f32 %v1117_v26, 0.0  ;;  %v3187_v20 = vpop.f32.mrf.mxu0 }
 0x243   :  { %v3175_v22 = vpop.f32.mrf.mxu1 }
 0x244   :  { %v3177_v48 = vpack.c.bf16 %v1187_v21, %v1186_v14  ;;  %v1922_v14 = vpop.f32.mrf.mxu0 }
 0x245   :  { %v3179_v36 = vpop.f32.mrf.mxu1 }
 0x246   :  { %3661 = vst [vmem:[#allocation103_spill] sm:$0xff] %v3177_v48  ;;  %v1923_v7 = vpop.f32.mrf.mxu0 }
 0x247   :  { %v1970_v60 = vpop.f32.mrf.mxu1 }
 0x248   :  { %v1925_v6 = vpop.f32.mrf.mxu0 }
 0x249   :  { %v1971_v17 = vpop.f32.mrf.mxu1 }
 0x24a   :  { %v1926_v0 = vpop.f32.mrf.mxu0 }
 0x24b   :  { %v1973_v33 = vpop.f32.mrf.mxu1 }
 0x24c   :  { %v1928_v23 = vpop.f32.mrf.mxu0 }
 0x24d   :  { %v1974_v19 = vpop.f32.mrf.mxu1 }
 0x24e   :  { %v1929_v46 = vpop.f32.mrf.mxu0 }
 0x24f   :  { %v1976_v11 = vpop.f32.mrf.mxu1 }
 0x250   :  { %v1931_v15 = vpop.f32.mrf.mxu0 }
 0x251   :  { %v1977_v9 = vpop.f32.mrf.mxu1 }
 0x252   :  { %v1932_v45 = vpop.f32.mrf.mxu0 }
 0x253   :  { %v1979_v26 = vpop.f32.mrf.mxu1 }
 0x255   :  { %v1980_v12 = vpop.f32.mrf.mxu1 }
 0x256   :  { %v1981_v59 = vadd.f32 %v1980_v12, %v1979_v26  ;;  %v1972_v12 = vadd.f32 %v1971_v17, %v1970_v60  ;;  %v3666_v26 = vld [vmem:[#allocation87_spill] sm:$0xff] }
 0x257   :  { %v1982_v21 = vpop.f32.mrf.mxu1 }
 0x259   :  { %v1983_v10 = vpop.f32.mrf.mxu1 }
 0x25a   :  { %v1984_v51 = vadd.f32 %v1983_v10, %v1982_v21  ;;  %v1141_v10 = vadd.f32 %v1981_v59, %v3093_v37 }
 0x25b   :  { %v1985_v5 = vpop.f32.mrf.mxu1 }
 0x25c   :  { %v1193_v59 = vmax.f32 %v1141_v10, 0.0 }
 0x25d   :  { %v1986_v8 = vpop.f32.mrf.mxu1 }
 0x25e   :  { %v1987_v55 = vadd.f32 %v1986_v8, %v1985_v5  ;;  %v1146_v5 = vadd.f32 %v1984_v51, %v3083_v54  ;;  %v1924_v51 = vadd.f32 %v1923_v7, %v1922_v14 }
 0x25f   :  { %v1988_v3 = vpop.f32.mrf.mxu1 }
 0x261   :  { %v1989_v1 = vpop.f32.mrf.mxu1 }
 0x262   :  { %v1990_v13 = vadd.f32 %v1989_v1, %v1988_v3  ;;  %v1978_v3 = vadd.f32 %v1977_v9, %v1976_v11  ;;  %v1927_v9 = vadd.f32 %v1926_v0, %v1925_v6  ;;  %v1921_v6 = vadd.f32 %v3187_v20, %v3185_v34  ;;  %v3664_v34 = vld [vmem:[#allocation101_spill] sm:$0xff] }
 0x263   :  { %v1991_v4 = vpop.f32.mrf.mxu1 }
 0x264   :  { %v1154_v24 = vadd.f32 %v1990_v13, %v3075_v28  ;;  %v1061_v14 = vadd.f32 %v1921_v6, %v3666_v26  ;;  %v3240_v6 = vld [vmem:[%s3471_s1 + $0x1] ss:$0 sm:$0xff] }
 0x265   :  { %v1992_v63 = vpop.f32.mrf.mxu1 }
 0x266   :  { %v1993_v48 = vadd.f32 %v1992_v63, %v1991_v4  ;;  %v1149_v63 = vadd.f32 %v1987_v55, %v3085_v49  ;;  %v1196_v8 = vmax.f32 %v1154_v24, 0.0  ;;  %v1138_v55 = vadd.f32 %v1978_v3, %v3091_v32  ;;  %v3669_v3 = vld [vmem:[#allocation85_spill] sm:$0xff]  ;;  %v3698_v32 = vld [vmem:[#allocation14_spill] sm:$0xff] }
 0x267   :  { %v1994_v27 = vpop.f32.mrf.mxu1 }
 0x268   :  { %v1157_v16 = vadd.f32 %v1993_v48, %v3077_v39  ;;  %v1933_v48 = vadd.f32 %v1932_v45, %v1931_v15  ;;  %v1130_v15 = vadd.f32 %v1972_v12, %v3099_v57  ;;  %v1192_v0 = vmax.f32 %v1138_v55, 0.0 }
 0x269   :  { %v1995_v2 = vpop.f32.mrf.mxu1 }
 0x26a   :  { %v1996_v30 = vadd.f32 %v1995_v2, %v1994_v27  ;;  %v1197_v4 = vmax.f32 %v1157_v16, 0.0  ;;  %v1194_v16 = vmax.f32 %v1146_v5, 0.0  ;;  %v1077_v11 = vadd.f32 %v1933_v48, %v3097_v52  ;;  %v3670_v48 = vld [vmem:[#allocation92_spill] sm:$0xff] }
 0x26b   :  { %v1997_v58 = vpop.f32.mrf.mxu1  ;;  %v1190_v17 = vmax.f32 %v1130_v15, 0.0  ;;  %v1860_v15 = vld [vmem:[%s3470_s0 + $0xf0] sm:$0xff] }
 0x26c   :  { %v1162_v29 = vadd.f32 %v1996_v30, %v3067_v56  ;;  %v1975_v30 = vadd.f32 %v1974_v19, %v1973_v33  ;;  %v1214_v13 = vpack.c.bf16 %v1197_v4, %v1196_v8  ;;  %v1177_v24 = vmax.f32 %v1077_v11, 0.0  ;;  %v3665_v19 = vld [vmem:[#allocation102_spill] sm:$0xff] }
 0x26d   :  { %v1998_v50 = vpop.f32.mrf.mxu1  ;;  %v1915_v20 = vadd.f32 %v3665_v19, %v3664_v34  ;;  %v3677_v34 = vld [vmem:[#allocation100_spill] sm:$0xff] }
 0x26e   :  { %v1999_v41 = vadd.f32 %v1998_v50, %v1997_v58  ;;  %v1198_v27 = vmax.f32 %v1162_v29, 0.0  ;;  %v1195_v50 = vmax.f32 %v1149_v63, 0.0  ;;  %v1930_v58 = vadd.f32 %v1929_v46, %v1928_v23 }
 0x26f   :  { %v1133_v33 = vadd.f32 %v1975_v30, %v3106_v40  ;;  %v1212_v46 = vpack.c.bf16 %v1193_v59, %v1192_v0  ;;  %v3671_v30 = vld [vmem:[#allocation95_spill] sm:$0xff]  ;;  %v1861_v0 = vld [vmem:[%s3470_s0 + $0xf8] sm:$0xff] }
 0x270   :  { %v1165_v18 = vadd.f32 %v1999_v41, %v3069_v31  ;;  %v1213_v45 = vpack.c.bf16 %v1195_v50, %v1194_v16  ;;  %v1074_v23 = vadd.f32 %v1930_v58, %v3095_v38  ;;  %v1069_v41 = vadd.f32 %v1927_v9, %v3115_v47  ;;  %v3672_v50 = vld [vmem:[#allocation94_spill] sm:$0xff]  ;;  %v3673_v16 = vld [vmem:[#allocation88_spill] sm:$0xff]  ;;  %v3697_v40 = vld [vmem:[#allocation13_spill] sm:$0xff] }
 0x271   :  { %v1191_v7 = vmax.f32 %v1133_v33, 0.0  ;;  %v1909_v10 = vadd.f32 %v3671_v30, %v3670_v48  ;;  %v1173_v58 = vmax.f32 %v1061_v14, 0.0  ;;  %v3674_v9 = vld [vmem:[#allocation90_spill] sm:$0xff] }
 0x272   :  { %v1199_v1 = vmax.f32 %v1165_v18, 0.0  ;;  %v1969_v18 = vadd.f32 %v3179_v36, %v3175_v22  ;;  %v1066_v22 = vadd.f32 %v1924_v51, %v3113_v61  ;;  %v3663_v36 = vld [vmem:[#allocation83_spill] sm:$0xff]  ;;  %v1175_v21 = vmax.f32 %v1069_v41, 0.0  ;;  %v3242_v41 = vpop.permute.xlu0 %689  ;;  %v2367_v48 = vld [vmem:[#allocation2] sm:$0xff]  }
 0x273   :  { %v1906_v11 = vadd.f32 %v3674_v9, %v3673_v16 }
 0x274   :  { %v1215_v2 = vpack.c.bf16 %v1199_v1, %v1198_v27  ;;  %v1125_v29 = vadd.f32 %v1969_v18, %v3120_v43  ;;  %v1211_v27 = vpack.c.bf16 %v1191_v7, %v1190_v17  ;;  %v3667_v1 = vld [vmem:[#allocation97_spill] sm:$0xff]  ;;  %v1174_v8 = vmax.f32 %v1066_v22, 0.0  ;;  %v3676_v7 = vld [vmem:[#allocation103_spill] sm:$0xff] }
 0x275   :  { %v3675_v18 = vld [vmem:[#allocation93_spill] sm:$0xff] }
 0x276   :  { %2000 = vmatprep.subr.bf16.mxu0 %v1215_v2  ;;  %v1189_v4 = vmax.f32 %v1125_v29, 0.0  ;;  %v1203_v12 = vpack.c.bf16 %v1175_v21, %v1174_v8  ;;  %v1854_v8 = vld [vmem:[%s3470_s0 + $0xc0] sm:$0xff] }
 0x277   :  { %2001 = vmatpush3.bf16.msra.mxu0 %v3151_v25  ;;  %v1966_v25 = vadd.f32 %v3171_v42, %v3168_v35  ;;  %v1176_v35 = vmax.f32 %v1074_v23, 0.0  ;;  %v3662_v42 = vld [vmem:[#allocation86_spill] sm:$0xff] }
 0x278   :  { %2002 = vmatprep.subr.bf16.mxu0 %v1214_v13  ;;  %v1053_v13 = vadd.f32 %v1915_v20, %v3672_v50 }
 0x279   :  { %v1122_v60 = vadd.f32 %v1966_v25, %v3663_v36  ;;  %v1204_v63 = vpack.c.bf16 %v1177_v24, %v1176_v35  ;;  %v1042_v24 = vadd.f32 %v1906_v11, %v3242_v41  ;;  %v1850_v11 = vld [vmem:[%s3470_s0 + $0xa0] sm:$0xff] }
 0x27a   :  { %v1171_v23 = vmax.f32 %v1053_v13, 0.0 }
 0x27b   :  { %2003 = vmatpush3.bf16.msra.mxu0 %v3139_v44  ;;  %v1918_v44 = vadd.f32 %v3183_v62, %v3181_v53  ;;  %v3668_v53 = vld [vmem:[#allocation99_spill] sm:$0xff]  ;;  %v1188_v2 = vmax.f32 %v1122_v60, 0.0  ;;  %v1168_v17 = vmax.f32 %v1042_v24, 0.0 }
 0x27c   :  { %2004 = vmatprep.subr.bf16.mxu0 %v1213_v45  ;;  %v1912_v62 = vadd.f32 %v3668_v53, %v3667_v1  ;;  %v3228_v45 = vpop.permute.xlu1 %694  ;;  %v1859_v60 = vld [vmem:[%s3470_s0 + $0xe8] sm:$0xff] }
 0x27d   :  { %v1058_v5 = vadd.f32 %v1918_v44, %v3669_v3  ;;  %v1210_v55 = vpack.c.bf16 %v1189_v4, %v1188_v2  ;;  %v1045_v51 = vadd.f32 %v1909_v10, %v3228_v45  ;;  %v1309_v44 = vmul.f32 %v3240_v6, %v1861_v0  ;;  %v1857_v4 = vld [vmem:[%s3470_s0 + $0xd8] sm:$0xff]  ;;  %v1855_v2 = vld [vmem:[%s3470_s0 + $0xc8] sm:$0xff] }
 0x27e   :  { %v1050_v33 = vadd.f32 %v1912_v62, %v3675_v18  ;;  %v1307_v14 = vmul.f32 %v3240_v6, %v1859_v60  ;;  %v1302_v10 = vmul.f32 %v3240_v6, %v1854_v8  ;;  %v1303_v13 = vmul.f32 %v3240_v6, %v1855_v2  ;;  %v2368_v60 = vld [vmem:[#allocation2 + $0x8] sm:$0xff]   ;;  %v2382_v8 = vld [vmem:[#allocation2 + $0x78] sm:$0xff]   ;;  %v3680_v2 = vld [vmem:[#allocation82_spill] sm:$0xff] }
 0x27f   :  { %2005 = vmatpush3.bf16.msra.mxu0 %v3662_v42  ;;  %v1172_v59 = vmax.f32 %v1058_v5, 0.0  ;;  %v1169_v22 = vmax.f32 %v1045_v51, 0.0  ;;  %v1858_v42 = vld [vmem:[%s3470_s0 + $0xe0] sm:$0xff]  ;;  %v1305_v5 = vmul.f32 %v3240_v6, %v1857_v4  ;;  %v1298_v51 = vmul.f32 %v3240_v6, %v1850_v11  ;;  %v2377_v4 = vld [vmem:[#allocation2 + $0x50] sm:$0xff]  }
 0x280   :  { %2006 = vmatprep.subr.bf16.mxu0 %v1212_v46  ;;  %v1170_v29 = vmax.f32 %v1050_v33, 0.0  ;;  %v1308_v46 = vmul.f32 %v3240_v6, %v1860_v15  ;;  %v1306_v20 = vmul.f32 %v3240_v6, %v1858_v42  ;;  %v1851_v33 = vld [vmem:[%s3470_s0 + $0xa8] sm:$0xff]  ;;  %v1849_v15 = vld [vmem:[%s3470_s0 + $0x98] sm:$0xff]  ;;  %v3682_v11 = vld [vmem:[#allocation34_spill] sm:$0xff] }
 0x281   :  { %v1202_v25 = vpack.c.bf16 %v1173_v58, %v1172_v59  ;;  %v1200_v21 = vpack.c.bf16 %v1169_v22, %v1168_v17  ;;  %v1852_v58 = vld [vmem:[%s3470_s0 + $0xb0] sm:$0xff] }
 0x282   :  { %v1201_v35 = vpack.c.bf16 %v1171_v23, %v1170_v29  ;;  %v1317_v19 = vpack.c.bf16 %v1309_v44, %v1308_v46  ;;  %v1316_v53 = vpack.c.bf16 %v1307_v14, %v1306_v20  ;;  %v1300_v16 = vmul.f32 %v3240_v6, %v1852_v58  ;;  %v1847_v46 = vld [vmem:[%s3470_s0 + $0x88] sm:$0xff]  ;;  %v2369_v17 = vld [vmem:[#allocation2 + $0x10] sm:$0xff]  }
 0x283   :  { %2007 = vmatpush3.bf16.msra.mxu0 %v1204_v63  ;;  %v1856_v63 = vld [vmem:[%s3470_s0 + $0xd0] sm:$0xff]  ;;  %v1299_v23 = vmul.f32 %v3240_v6, %v1851_v33  ;;  %v1297_v29 = vmul.f32 %v3240_v6, %v1849_v15  ;;  %v2372_v20 = vld [vmem:[#allocation2 + $0x28] sm:$0xff]  }
 0x284   :  { %2008 = vmatprep.subr.bf16.mxu0 %v1211_v27  ;;  %v3678_v27 = vld [vmem:[#allocation80_spill] sm:$0xff]  ;;  %v1304_v62 = vmul.f32 %v3240_v6, %v1856_v63  ;;  %v2376_v63 = vld [vmem:[#allocation2 + $0x48] sm:$0xff]  }
 0x285   :  { %v3265_v1 = vcombine.low %v3678_v27, %v3678_v27  ;;  %v1312_v0 = vpack.c.bf16 %v1299_v23, %v1298_v51  ;;  %v2373_v14 = vld [vmem:[#allocation2 + $0x30] sm:$0xff]   ;;  %v2378_v27 = vld [vmem:[#allocation2 + $0x58] sm:$0xff]   ;;  %v3683_v51 = vld [vmem:[#allocation38_spill] sm:$0xff] }
 0x286   :  { %v1315_v30 = vpack.c.bf16 %v1305_v5, %v1304_v62  ;;  %v2380_v62 = vld [vmem:[#allocation2 + $0x68] sm:$0xff]   ;;  %v2381_v5 = vld [vmem:[#allocation2 + $0x70] sm:$0xff]  }
 0x287   :  { %2009 = vmatpush3.bf16.msra.mxu0 %v1203_v12  ;;  %3679 = vst [vmem:[#allocation86_spill] sm:$0xff] %v3265_v1  ;;  %v1853_v12 = vld [vmem:[%s3470_s0 + $0xb8] sm:$0xff] }
 0x288   :  { %2010 = vmatprep.subr.bf16.mxu0 %v1210_v55  ;;  %v1314_v55 = vpack.c.bf16 %v1303_v13, %v1302_v10  ;;  %v1301_v9 = vmul.f32 %v3240_v6, %v1853_v12  ;;  %v3311_v13 = vpop.permute.xlu0 %1218 }
 0x289   :  { %3681 = vst [vmem:[#allocation101_spill] sm:$0xff] %v3311_v13 }
 0x28a   :  { %v1313_v59 = vpack.c.bf16 %v1301_v9, %v1300_v16 }
 0x28b   :  { %2011 = vmatpush3.bf16.msra.mxu0 %v1202_v25  ;;  %v1848_v25 = vld [vmem:[%s3470_s0 + $0x90] sm:$0xff] }
 0x28c   :  { %2012 = vmatprep.subr.bf16.mxu0 %v3676_v7  ;;  %v1296_v24 = vmul.f32 %v3240_v6, %v1848_v25  ;;  %v1846_v7 = vld [vmem:[%s3470_s0 + $0x80] sm:$0xff]  ;;  %v3684_v25 = vld [vmem:[#allocation35_spill] sm:$0xff] }
 0x28d   :  { %v1294_v22 = vmul.f32 %v3240_v6, %v1846_v7  ;;  %v3685_v7 = vld [vmem:[#allocation39_spill] sm:$0xff] }
 0x28e   :  { %v1311_v44 = vpack.c.bf16 %v1297_v29, %v1296_v24 }
 0x28f   :  { %2013 = vmatpush3.bf16.msra.mxu0 %v1201_v35  ;;  %v1295_v35 = vmul.f32 %v3240_v6, %v1847_v46  ;;  %v2375_v6 = vld [vmem:[#allocation2 + $0x40] sm:$0xff]  }
 0x290   :  { %2014 = vmatprep.subr.bf16.mxu0 %v3677_v34  ;;  %v2370_v34 = vld [vmem:[#allocation2 + $0x18] sm:$0xff]  }
 0x291   :  { %v1310_v42 = vpack.c.bf16 %v1295_v35, %v1294_v22 }
 0x293   :  { %2015 = vmatpush3.bf16.msra.mxu0 %v1200_v21  ;;  %v2374_v21 = vld [vmem:[#allocation2 + $0x38] sm:$0xff]  }
 0x294   :  { %2228 = vmatprep.subr.bf16.mxu0 %v1317_v19 }
 0x296   :  { %1261 = vmatmul.mubr.bf16.vlgmr.msra.gmra.mxu0 %v3265_v1  ;;  %v3696_v1 = vld [vmem:[#allocation17_spill] sm:$0xff] }
 0x297   :  { %2229 = vmatpush3.bf16.msra.mxu0 %v1317_v19  ;;  %2244 = vmatprep.mubr.bf16.mxu0 %v2367_v48  ;;  %v2371_v19 = vld [vmem:[#allocation2 + $0x20] sm:$0xff]  }
 0x298   :  { %2230 = vmatprep.subr.bf16.mxu0 %v1316_v53 }
 0x29b   :  { %2231 = vmatpush3.bf16.msra.mxu0 %v1316_v53  ;;  %v2379_v53 = vld [vmem:[#allocation2 + $0x60] sm:$0xff]  }
 0x29c   :  { %2232 = vmatprep.subr.bf16.mxu0 %v1315_v30 }
 0x29f   :  { %2233 = vmatpush3.bf16.msra.mxu0 %v1315_v30 }
 0x2a0   :  { %2234 = vmatprep.subr.bf16.mxu0 %v1314_v55 }
 0x2a3   :  { %2235 = vmatpush3.bf16.msra.mxu0 %v1314_v55 }
 0x2a4   :  { %2236 = vmatprep.subr.bf16.mxu0 %v1313_v59 }
 0x2a7   :  { %2237 = vmatpush3.bf16.msra.mxu0 %v1313_v59 }
 0x2a8   :  { %2238 = vmatprep.subr.bf16.mxu0 %v1312_v0 }
 0x2ab   :  { %2239 = vmatpush3.bf16.msra.mxu0 %v1312_v0 }
 0x2ac   :  { %2240 = vmatprep.subr.bf16.mxu0 %v1311_v44 }
 0x2af   :  { %2241 = vmatpush3.bf16.msra.mxu0 %v1311_v44 }
 0x2b0   :  { %2242 = vmatprep.subr.bf16.mxu0 %v1310_v42 }
 0x2b3   :  { %2243 = vmatpush3.bf16.msra.mxu0 %v1310_v42 }
 0x2b6   :  { %2245 = vmatmul.mubr.bf16.vlgmr.msra.gmra.mxu0 %v2368_v60 }
 0x2b7   :  { %2248 = vmatprep.mubr.bf16.mxu0 %v2369_v17 }
 0x2be   :  { %2249 = vmatmul.mubr.bf16.gmra.mxu0 %v2370_v34  ;;  %v3686_v34 = vld [vmem:[#allocation26_spill] sm:$0xff] }
 0x2bf   :  { %2252 = vmatprep.mubr.bf16.mxu0 %v2371_v19 }
 0x2c6   :  { %2253 = vmatmul.mubr.bf16.gmra.mxu0 %v2372_v20 }
 0x2c7   :  { %2256 = vmatprep.mubr.bf16.mxu0 %v2373_v14  ;;  %v3687_v14 = vld [vmem:[#allocation30_spill] sm:$0xff] }
 0x2ce   :  { %2257 = vmatmul.mubr.bf16.gmra.mxu0 %v2374_v21 }
 0x2cf   :  { %2260 = vmatprep.mubr.bf16.mxu0 %v2375_v6  ;;  %v3688_v6 = vld [vmem:[#allocation27_spill] sm:$0xff] }
 0x2d6   :  { %2261 = vmatmul.mubr.bf16.gmra.mxu0 %v2376_v63 }
 0x2d7   :  { %2264 = vmatprep.mubr.bf16.mxu0 %v2377_v4 }
 0x2de   :  { %2265 = vmatmul.mubr.bf16.gmra.mxu0 %v2378_v27 }
 0x2df   :  { %2268 = vmatprep.mubr.bf16.mxu0 %v2379_v53 }
 0x2e6   :  { %2269 = vmatmul.mubr.bf16.gmra.mxu0 %v2380_v62  ;;  %v3689_v62 = vld [vmem:[#allocation31_spill] sm:$0xff] }
 0x2e7   :  { %2272 = vmatprep.mubr.bf16.mxu0 %v2381_v5 }
 0x2ee   :  { %2273 = vmatmul.mubr.bf16.gmra.mxu0 %v2382_v8 }
 0x2ef   :  { %1768 = vmatprep.mubr.bf16.mxu0 %v3680_v2 }
 0x356   :  { %v2016_v48 = vpop.f32.mrf.mxu0 }
 0x358   :  { %v2017_v30 = vpop.f32.mrf.mxu0 }
 0x359   :  { %v2018_v10 = vadd.f32 %v2017_v30, %v2016_v48 }
 0x35a   :  { %v2019_v58 = vpop.f32.mrf.mxu0 }
 0x35b   :  { %v1263_v12 = vadd.f32 %v2018_v10, %v3311_v13 }
 0x35c   :  { %v2020_v55 = vpop.f32.mrf.mxu0 }
 0x35d   :  { %1268 = vst [vmem:[#allocation5] sm:$0xff] %v1263_v12 }
 0x376   :  { %v2246_v16 = vpop.f32.mrf.mxu0 }
 0x377   :  { %v1361_v33 = vadd.f32 %v2246_v16, %v3682_v11 }
 0x378   :  { %v1352_v9 = vpop.f32.mrf.mxu0 }
 0x379   :  { %v1353_v23 = vadd.f32 %v1352_v9, %v3683_v51  ;;  %v1481_v24 = vmax.f32 %v1361_v33, 0.0 }
 0x37a   :  { %v2247_v59 = vpop.f32.mrf.mxu0 }
 0x37b   :  { %v1364_v15 = vadd.f32 %v2247_v59, %v3684_v25  ;;  %v1479_v22 = vmax.f32 %v1353_v23, 0.0 }
 0x37c   :  { %v1355_v0 = vpop.f32.mrf.mxu0 }
 0x37d   :  { %v1482_v29 = vmax.f32 %v1364_v15, 0.0  ;;  %v1356_v46 = vadd.f32 %v1355_v0, %v3685_v7 }
 0x37e   :  { %v2250_v44 = vpop.f32.mrf.mxu0 }
 0x37f   :  { %v3318_v35 = vpack.c.bf16 %v1482_v29, %v1481_v24  ;;  %v1480_v42 = vmax.f32 %v1356_v46, 0.0  ;;  %v1377_v19 = vadd.f32 %v2250_v44, %v3686_v34 }
 0x380   :  { %v1368_v60 = vpop.f32.mrf.mxu0 }
 0x381   :  { %v3320_v17 = vpack.c.bf16 %v1480_v42, %v1479_v22  ;;  %v1369_v21 = vadd.f32 %v1368_v60, %v3687_v14  ;;  %v1485_v27 = vmax.f32 %v1377_v19, 0.0  ;;  %v3690_v60 = vld [vmem:[#allocation11_spill] sm:$0xff] }
 0x382   :  { %v2251_v20 = vpop.f32.mrf.mxu0 }
 0x383   :  { %v1380_v63 = vadd.f32 %v2251_v20, %v3688_v6  ;;  %v1483_v2 = vmax.f32 %v1369_v21, 0.0  ;;  %v3691_v20 = vld [vmem:[#allocation8_spill] sm:$0xff]  ;;  %v3692_v21 = vld [vmem:[#allocation9_spill] sm:$0xff] }
 0x384   :  { %v1371_v4 = vpop.f32.mrf.mxu0 }
 0x385   :  { %v1486_v53 = vmax.f32 %v1380_v63, 0.0  ;;  %v1372_v5 = vadd.f32 %v1371_v4, %v3689_v62  ;;  %v3693_v4 = vld [vmem:[#allocation12_spill] sm:$0xff] }
 0x386   :  { %v2254_v8 = vpop.f32.mrf.mxu0 }
 0x387   :  { %v3326_v48 = vpack.c.bf16 %v1486_v53, %v1485_v27  ;;  %v1484_v30 = vmax.f32 %v1372_v5, 0.0  ;;  %v3694_v53 = vld [vmem:[#allocation10_spill] sm:$0xff] }
 0x388   :  { %v1384_v10 = vpop.f32.mrf.mxu0 }
 0x389   :  { %v3328_v58 = vpack.c.bf16 %v1484_v30, %v1483_v2  ;;  %v3695_v2 = vld [vmem:[#allocation15_spill] sm:$0xff] }
 0x38a   :  { %v2255_v12 = vpop.f32.mrf.mxu0 }
 0x38c   :  { %v1387_v55 = vpop.f32.mrf.mxu0 }
 0x38e   :  { %v2258_v16 = vpop.f32.mrf.mxu0 }
 0x38f   :  { %v1409_v6 = vadd.f32 %v2258_v16, %v3692_v21 }
 0x390   :  { %v1400_v9 = vpop.f32.mrf.mxu0 }
 0x392   :  { %v2259_v11 = vpop.f32.mrf.mxu0 }
 0x393   :  { %v1412_v34 = vadd.f32 %v2259_v11, %v3690_v60  ;;  %v1493_v60 = vmax.f32 %v1409_v6, 0.0 }
 0x394   :  { %v1403_v33 = vpop.f32.mrf.mxu0 }
 0x395   :  { %v1494_v5 = vmax.f32 %v1412_v34, 0.0  ;;  %v1404_v30 = vadd.f32 %v1403_v33, %v3695_v2  ;;  %v3701_v2 = vld [vmem:[#allocation21_spill] sm:$0xff] }
 0x396   :  { %v3330_v59 = vpop.f32.mrf.mxu0 }
 0x397   :  { %v1518_v34 = vpack.c.bf16 %v1494_v5, %v1493_v60 }
 0x398   :  { %v3332_v51 = vpop.f32.mrf.mxu0 }
 0x39a   :  { %v3334_v23 = vpop.f32.mrf.mxu0 }
 0x39c   :  { %v3336_v25 = vpop.f32.mrf.mxu0 }
 0x39e   :  { %v2266_v15 = vpop.f32.mrf.mxu0 }
 0x3a0   :  { %v1432_v0 = vpop.f32.mrf.mxu0 }
 0x3a2   :  { %v2267_v24 = vpop.f32.mrf.mxu0 }
 0x3a4   :  { %v1435_v29 = vpop.f32.mrf.mxu0 }
 0x3a6   :  { %v2270_v7 = vpop.f32.mrf.mxu0 }
 0x3a8   :  { %v1448_v46 = vpop.f32.mrf.mxu0 }
 0x3aa   :  { %v2271_v44 = vpop.f32.mrf.mxu0 }
 0x3ab   :  { %v1460_v36 = vadd.f32 %v2271_v44, %v3696_v1  ;;  %v3702_v44 = vld [vmem:[#allocation18_spill] sm:$0xff] }
 0x3ac   :  { %v1451_v22 = vpop.f32.mrf.mxu0 }
 0x3ad   :  { %v1506_v33 = vmax.f32 %v1460_v36, 0.0  ;;  %v1452_v54 = vadd.f32 %v1451_v22, %v3701_v2  ;;  %v3706_v22 = vld [vmem:[#allocation22_spill] sm:$0xff] }
 0x3ae   :  { %v2274_v42 = vpop.f32.mrf.mxu0 }
 0x3af   :  { %v1473_v14 = vadd.f32 %v2274_v42, %v3691_v20  ;;  %v1401_v42 = vadd.f32 %v1400_v9, %v3698_v32  ;;  %v3699_v20 = vld [vmem:[#allocation16_spill] sm:$0xff]  ;;  %v1504_v36 = vmax.f32 %v1452_v54, 0.0 }
 0x3b0   :  { %v1464_v19 = vpop.f32.mrf.mxu0  ;;  %v1457_v16 = vadd.f32 %v2270_v7, %v3699_v20  ;;  %v3703_v32 = vld [vmem:[#allocation20_spill] sm:$0xff]  ;;  %v3708_v20 = vld [vmem:[#allocation29_spill] sm:$0xff] }
 0x3b1   :  { %v1465_v27 = vadd.f32 %v1464_v19, %v3693_v4  ;;  %v1509_v43 = vmax.f32 %v1473_v14, 0.0  ;;  %v3700_v4 = vld [vmem:[#allocation19_spill] sm:$0xff]  ;;  %v1393_v14 = vadd.f32 %v2254_v8, %v3702_v44  ;;  %v1449_v9 = vadd.f32 %v1448_v46, %v3703_v32 }
 0x3b2   :  { %v2275_v63 = vpop.f32.mrf.mxu0 }
 0x3b3   :  { %v1476_v62 = vadd.f32 %v2275_v63, %v3694_v53  ;;  %v1507_v21 = vmax.f32 %v1465_v27, 0.0  ;;  %v1396_v63 = vadd.f32 %v2255_v12, %v3700_v4  ;;  %v1492_v53 = vmax.f32 %v1404_v30, 0.0  ;;  %v3705_v12 = vld [vmem:[#allocation25_spill] sm:$0xff] }
 0x3b4   :  { %v1467_v13 = vpop.f32.mrf.mxu0  ;;  %v1444_v27 = vadd.f32 %v2267_v24, %v3705_v12  ;;  %v1489_v5 = vmax.f32 %v1393_v14, 0.0  ;;  %v1385_v30 = vadd.f32 %v1384_v10, %v3706_v22  ;;  %v3709_v24 = vld [vmem:[#allocation28_spill] sm:$0xff]  ;;  %v3723_v12 = vld [vmem:[#allocation41_spill] sm:$0xff]  ;;  %v3728_v22 = vld [vmem:[#allocation51_spill] sm:$0xff] }
 0x3b5   :  { %v1510_v57 = vmax.f32 %v1476_v62, 0.0  ;;  %v1468_v11 = vadd.f32 %v1467_v13, %v3697_v40  ;;  %v1491_v40 = vmax.f32 %v1401_v42, 0.0  ;;  %v1505_v13 = vmax.f32 %v1457_v16, 0.0 }
 0x3b6   :  { %v1490_v7 = vmax.f32 %v1396_v63, 0.0  ;;  %v1502_v46 = vmax.f32 %v1444_v27, 0.0  ;;  %v1436_v16 = vadd.f32 %v1435_v29, %v3708_v20  ;;  %v1433_v4 = vadd.f32 %v1432_v0, %v3709_v24  ;;  %v3710_v63 = vld [vmem:[#allocation33_spill] sm:$0xff]  ;;  %v3724_v27 = vld [vmem:[#allocation43_spill] sm:$0xff]  ;;  %v3736_v20 = vld [vmem:[#allocation62_spill] sm:$0xff] }
 0x3b7   :  { %v1526_v37 = vpack.c.bf16 %v1510_v57, %v1509_v43  ;;  %v1508_v19 = vmax.f32 %v1468_v11, 0.0  ;;  %v3704_v43 = vld [vmem:[#allocation23_spill] sm:$0xff]  ;;  %v1517_v6 = vpack.c.bf16 %v1492_v53, %v1491_v40  ;;  %v1524_v62 = vpack.c.bf16 %v1506_v33, %v1505_v13  ;;  %v3711_v53 = vld [vmem:[#allocation32_spill] sm:$0xff] }
 0x3b8   :  { %v1388_v57 = vadd.f32 %v1387_v55, %v3704_v43  ;;  %v1503_v11 = vmax.f32 %v1449_v9, 0.0  ;;  %v1516_v60 = vpack.c.bf16 %v1490_v7, %v1489_v5  ;;  %v1487_v55 = vmax.f32 %v1385_v30, 0.0  ;;  %v3713_v40 = vld [vmem:[#allocation36_spill] sm:$0xff]  ;;  %v3727_v5 = vld [vmem:[#allocation49_spill] sm:$0xff]  ;;  %v3741_v24 = vld [vmem:[#allocation67_spill] sm:$0xff] }
 0x3b9   :  { %v1525_v1 = vpack.c.bf16 %v1508_v19, %v1507_v21  ;;  %2046 = vmatprep.subr.bf16.mxu1 %v1526_v37  ;;  %v3707_v37 = vld [vmem:[#allocation24_spill] sm:$0xff]  ;;  %v1428_v10 = vadd.f32 %v3334_v23, %v3710_v63  ;;  %v1425_v33 = vadd.f32 %v3330_v59, %v3711_v53  ;;  %v1499_v2 = vmax.f32 %v1433_v4, 0.0  ;;  %v3729_v30 = vld [vmem:[#allocation53_spill] sm:$0xff] }
 0x3ba   :  { %2047 = vmatpush3.bf16.msra.mxu1 %v1518_v34  ;;  %v1441_v8 = vadd.f32 %v2266_v15, %v3707_v37  ;;  %v1488_v42 = vmax.f32 %v1388_v57, 0.0  ;;  %v1523_v21 = vpack.c.bf16 %v1504_v36, %v1503_v11  ;;  %v1500_v15 = vmax.f32 %v1436_v16, 0.0  ;;  %v3716_v7 = vld [vmem:[#allocation44_spill] sm:$0xff]  ;;  %v3719_v57 = vld [vmem:[#allocation50_spill] sm:$0xff]  ;;  %v3726_v36 = vld [vmem:[#allocation47_spill] sm:$0xff] }
 0x3bb   :  { %2048 = vmatprep.subr.bf16.mxu1 %v1525_v1  ;;  %v1498_v29 = vmax.f32 %v1428_v10, 0.0  ;;  %v3712_v1 = vld [vmem:[#allocation37_spill] sm:$0xff]  ;;  %v1497_v0 = vmax.f32 %v1425_v33, 0.0  ;;  %v1417_v13 = vadd.f32 %v3332_v51, %v3713_v40  ;;  %v3717_v51 = vld [vmem:[#allocation46_spill] sm:$0xff]  ;;  %v3718_v43 = vld [vmem:[#allocation48_spill] sm:$0xff] }
 0x3bc   :  { %v1501_v19 = vmax.f32 %v1441_v8, 0.0  ;;  %v1515_v54 = vpack.c.bf16 %v1488_v42, %v1487_v55  ;;  %v1420_v44 = vadd.f32 %v3336_v25, %v3712_v1  ;;  %v1521_v14 = vpack.c.bf16 %v1500_v15, %v1499_v2  ;;  %v3714_v25 = vld [vmem:[#allocation40_spill] sm:$0xff]  ;;  %v3730_v37 = vld [vmem:[#allocation55_spill] sm:$0xff]  ;;  %v3731_v8 = vld [vmem:[#allocation57_spill] sm:$0xff] }
 0x3bd   :  { %v1520_v23 = vpack.c.bf16 %v1498_v29, %v1497_v0  ;;  %v1495_v9 = vmax.f32 %v1417_v13, 0.0  ;;  %v3732_v11 = vld [vmem:[#allocation58_spill] sm:$0xff]  ;;  %v3734_v42 = vld [vmem:[#allocation60_spill] sm:$0xff]  ;;  %v3737_v16 = vld [vmem:[#allocation63_spill] sm:$0xff] }
 0x3be   :  { %2049 = vmatpush3.bf16.msra.mxu1 %v1517_v6  ;;  %v1522_v34 = vpack.c.bf16 %v1502_v46, %v1501_v19  ;;  %v1496_v32 = vmax.f32 %v1420_v44, 0.0  ;;  %v3721_v6 = vld [vmem:[#allocation54_spill] sm:$0xff]  ;;  %v3735_v46 = vld [vmem:[#allocation61_spill] sm:$0xff]  ;;  %v3742_v4 = vld [vmem:[#allocation68_spill] sm:$0xff] }
 0x3bf   :  { %2050 = vmatprep.subr.bf16.mxu1 %v1524_v62  ;;  %v3725_v62 = vld [vmem:[#allocation45_spill] sm:$0xff]  ;;  %v3740_v19 = vld [vmem:[#allocation66_spill] sm:$0xff] }
 0x3c0   :  { %v1519_v59 = vpack.c.bf16 %v1496_v32, %v1495_v9  ;;  %v3739_v55 = vld [vmem:[#allocation65_spill] sm:$0xff] }
 0x3c2   :  { %2051 = vmatpush3.bf16.msra.mxu1 %v1516_v60  ;;  %v3733_v60 = vld [vmem:[#allocation59_spill] sm:$0xff] }
 0x3c3   :  { %2052 = vmatprep.subr.bf16.mxu1 %v1523_v21  ;;  %v3738_v21 = vld [vmem:[#allocation64_spill] sm:$0xff] }
 0x3c6   :  { %2053 = vmatpush3.bf16.msra.mxu1 %v1515_v54  ;;  %v3743_v54 = vld [vmem:[#allocation69_spill] sm:$0xff] }
 0x3c7   :  { %2054 = vmatprep.subr.bf16.mxu1 %v1522_v34 }
 0x3ca   :  { %2055 = vmatpush3.bf16.msra.mxu1 %v3326_v48  ;;  %v3715_v48 = vld [vmem:[#allocation42_spill] sm:$0xff] }
 0x3cb   :  { %2056 = vmatprep.subr.bf16.mxu1 %v1521_v14 }
 0x3ce   :  { %2057 = vmatpush3.bf16.msra.mxu1 %v3328_v58  ;;  %v3720_v58 = vld [vmem:[#allocation52_spill] sm:$0xff] }
 0x3cf   :  { %2058 = vmatprep.subr.bf16.mxu1 %v1520_v23 }
 0x3d2   :  { %2059 = vmatpush3.bf16.msra.mxu1 %v3318_v35  ;;  %v3722_v35 = vld [vmem:[#allocation56_spill] sm:$0xff] }
 0x3d3   :  { %2060 = vmatprep.subr.bf16.mxu1 %v1519_v59 }
 0x3d6   :  { %2061 = vmatpush3.bf16.msra.mxu1 %v3320_v17  ;;  %v2383_v17 = vld [vmem:[%s3474_s4 + $0x54] ss:$8 sps:$4 sm:$0xff]   ;;  %s2432_s4 = smov [#allocation5]  }
 0x3d7   :  { %s1783_s28 = sshll.u32 %s2432_s4, 4  ;;  %s1784_s28 = int_to_ptr.vmem [resolvable:$true] %s1783_s28 }
 0x3d8   :  { %s2404_s1 = scalar_lea.vmem %s1784_s28, 256  ;;  %p2409_p6 = scmp.lt.s32.totalorder %s1784_s28, %s1784_s28 }
 0x3d9   :  { %1560 = vmatmul.mubr.bf16.vlgmr.msra.gmra.mxu1 %v3714_v25  ;;  %p2405_p5 = scmp.ne.s32.totalorder %s1784_s28, %s2404_s1  ;;  %p2410_p7 = scmp.lt.s32.totalorder %s2404_s1, %s2404_s1 }
 0x3da   :  { %1567 = vmatprep.mubr.bf16.mxu1 %v3715_v48 }
 0x3db   :  { %p2411_p8 = por %p2410_p7, %p2409_p6 }
 0x3dd   :  { %p2412_p9 = pnand %p2411_p8, %p2405_p5 }
 0x3e1   :  { %1568 = vmatmul.mubr.bf16.gmra.mxu1 %v3716_v7 }
 0x3e2   :  { %1575 = vmatprep.mubr.bf16.mxu1 %v3717_v51 }
 0x3e9   :  { %1576 = vmatmul.mubr.bf16.gmra.mxu1 %v3718_v43 }
 0x3ea   :  { %1583 = vmatprep.mubr.bf16.mxu1 %v3719_v57 }
 0x3f1   :  { %1584 = vmatmul.mubr.bf16.gmra.mxu1 %v3720_v58 }
 0x3f2   :  { %1591 = vmatprep.mubr.bf16.mxu1 %v3721_v6 }
 0x3f9   :  { %1592 = vmatmul.mubr.bf16.gmra.mxu1 %v3722_v35 }
 0x3fa   :  { %1599 = vmatprep.mubr.bf16.mxu1 %v2383_v17 }
 0x401   :  { %1600 = vmatmul.mubr.bf16.gmra.mxu1 %v3723_v12 }
 0x402   :  { %1607 = vmatprep.mubr.bf16.mxu1 %v3724_v27 }
 0x409   :  { %1608 = vmatmul.mubr.bf16.gmra.mxu1 %v3725_v62 }
 0x40a   :  { %1615 = vmatprep.mubr.bf16.mxu1 %v3726_v36 }
 0x411   :  { %1616 = vmatmul.mubr.bf16.gmra.mxu1 %v3727_v5 }
 0x412   :  { %1623 = vmatprep.mubr.bf16.mxu1 %v3728_v22 }
 0x419   :  { %1624 = vmatmul.mubr.bf16.gmra.mxu1 %v3729_v30 }
 0x41a   :  { %1631 = vmatprep.mubr.bf16.mxu1 %v3730_v37 }
 0x421   :  { %1632 = vmatmul.mubr.bf16.gmra.mxu1 %v3731_v8 }
 0x422   :  { %1639 = vmatprep.mubr.bf16.mxu1 %v3732_v11 }
 0x429   :  { %1640 = vmatmul.mubr.bf16.gmra.mxu1 %v3733_v60 }
 0x42a   :  { %1647 = vmatprep.mubr.bf16.mxu1 %v3734_v42 }
 0x431   :  { %1648 = vmatmul.mubr.bf16.gmra.mxu1 %v3735_v46 }
 0x432   :  { %1655 = vmatprep.mubr.bf16.mxu1 %v3736_v20 }
 0x439   :  { %1656 = vmatmul.mubr.bf16.gmra.mxu1 %v3737_v16 }
 0x43a   :  { %1663 = vmatprep.mubr.bf16.mxu1 %v3738_v21 }
 0x441   :  { %1664 = vmatmul.mubr.bf16.gmra.mxu1 %v3739_v55 }
 0x442   :  { %1671 = vmatprep.mubr.bf16.mxu1 %v3740_v19 }
 0x449   :  { %1672 = vmatmul.mubr.bf16.gmra.mxu1 %v3741_v24 }
 0x44a   :  { %1679 = vmatprep.mubr.bf16.mxu1 %v3742_v4 }
 0x451   :  { %1680 = vmatmul.mubr.bf16.gmra.mxu1 %v3743_v54 }
 0x499   :  { %v2062_v63 = vpop.f32.mrf.mxu1 }
 0x49b   :  { %v2063_v10 = vpop.f32.mrf.mxu1 }
 0x49c   :  { %v2064_v34 = vadd.f32 %v2063_v10, %v2062_v63 }
 0x49d   :  { %v2065_v15 = vpop.f32.mrf.mxu1 }
 0x49e   :  { %v1562_v33 = vadd.f32 %v2064_v34, %v3242_v41 }
 0x49f   :  { %v2066_v53 = vpop.f32.mrf.mxu1 }
 0x4a0   :  { %v2067_v2 = vadd.f32 %v2066_v53, %v2065_v15  ;;  %v1688_v14 = vmax.f32 %v1562_v33, 0.0  ;;  %v3744_v15 = vld [vmem:[#allocation75_spill] sm:$0xff] }
 0x4a1   :  { %v2068_v29 = vpop.f32.mrf.mxu1 }
 0x4a2   :  { %v1565_v1 = vadd.f32 %v2067_v2, %v3228_v45 }
 0x4a3   :  { %v2069_v44 = vpop.f32.mrf.mxu1 }
 0x4a4   :  { %v1689_v0 = vmax.f32 %v1565_v1, 0.0  ;;  %v2070_v40 = vadd.f32 %v2069_v44, %v2068_v29  ;;  %v3745_v29 = vld [vmem:[#allocation76_spill] sm:$0xff] }
 0x4a5   :  { %v2071_v13 = vpop.f32.mrf.mxu1 }
 0x4a6   :  { %v3405_v23 = vpack.c.bf16 %v1689_v0, %v1688_v14  ;;  %v1570_v9 = vadd.f32 %v2070_v40, %v3675_v18 }
 0x4a7   :  { %v2072_v32 = vpop.f32.mrf.mxu1 }
 0x4a8   :  { %v2073_v59 = vadd.f32 %v2072_v32, %v2071_v13  ;;  %v1690_v41 = vmax.f32 %v1570_v9, 0.0  ;;  %v3746_v32 = vld [vmem:[#allocation72_spill] sm:$0xff] }
 0x4a9   :  { %v2074_v25 = vpop.f32.mrf.mxu1 }
 0x4aa   :  { %v1573_v48 = vadd.f32 %v2073_v59, %v3672_v50 }
 0x4ab   :  { %v2075_v7 = vpop.f32.mrf.mxu1 }
 0x4ac   :  { %v1691_v51 = vmax.f32 %v1573_v48, 0.0  ;;  %v2076_v43 = vadd.f32 %v2075_v7, %v2074_v25  ;;  %v3747_v48 = vld [vmem:[#allocation73_spill] sm:$0xff] }
 0x4ad   :  { %v2077_v57 = vpop.f32.mrf.mxu1 }
 0x4ae   :  { %v3409_v45 = vpack.c.bf16 %v1691_v51, %v1690_v41  ;;  %v1578_v6 = vadd.f32 %v2076_v43, %v3669_v3 }
 0x4af   :  { %v2078_v58 = vpop.f32.mrf.mxu1 }
 0x4b0   :  { %v2079_v35 = vadd.f32 %v2078_v58, %v2077_v57  ;;  %v1692_v18 = vmax.f32 %v1578_v6, 0.0 }
 0x4b1   :  { %v2080_v17 = vpop.f32.mrf.mxu1 }
 0x4b2   :  { %v1581_v12 = vadd.f32 %v2079_v35, %v3666_v26 }
 0x4b3   :  { %v2081_v27 = vpop.f32.mrf.mxu1 }
 0x4b4   :  { %v1693_v62 = vmax.f32 %v1581_v12, 0.0  ;;  %v2082_v36 = vadd.f32 %v2081_v27, %v2080_v17  ;;  %v3748_v17 = vld [vmem:[#allocation70_spill] sm:$0xff] }
 0x4b5   :  { %v2083_v5 = vpop.f32.mrf.mxu1 }
 0x4b6   :  { %v3413_v50 = vpack.c.bf16 %v1693_v62, %v1692_v18  ;;  %v1586_v30 = vadd.f32 %v2082_v36, %v3113_v61  ;;  %v3749_v62 = vld [vmem:[#allocation71_spill] sm:$0xff] }
 0x4b7   :  { %v2084_v22 = vpop.f32.mrf.mxu1 }
 0x4b8   :  { %v2085_v37 = vadd.f32 %v2084_v22, %v2083_v5  ;;  %v1694_v3 = vmax.f32 %v1586_v30, 0.0 }
 0x4b9   :  { %v2086_v8 = vpop.f32.mrf.mxu1 }
 0x4ba   :  { %v1589_v11 = vadd.f32 %v2085_v37, %v3115_v47 }
 0x4bb   :  { %v2087_v60 = vpop.f32.mrf.mxu1 }
 0x4bc   :  { %v1695_v42 = vmax.f32 %v1589_v11, 0.0  ;;  %v2088_v46 = vadd.f32 %v2087_v60, %v2086_v8 }
 0x4bd   :  { %v2089_v20 = vpop.f32.mrf.mxu1 }
 0x4be   :  { %v3417_v26 = vpack.c.bf16 %v1695_v42, %v1694_v3  ;;  %v1594_v21 = vadd.f32 %v2088_v46, %v3095_v38  ;;  %v3750_v3 = vld [vmem:[#allocation96_spill] sm:$0xff] }
 0x4bf   :  { %v2090_v16 = vpop.f32.mrf.mxu1 }
 0x4c0   :  { %v2091_v55 = vadd.f32 %v2090_v16, %v2089_v20  ;;  %v1696_v61 = vmax.f32 %v1594_v21, 0.0  ;;  %v3751_v16 = vld [vmem:[#allocation98_spill] sm:$0xff] }
 0x4c1   :  { %v2092_v19 = vpop.f32.mrf.mxu1 }
 0x4c2   :  { %v1597_v24 = vadd.f32 %v2091_v55, %v3097_v52 }
 0x4c3   :  { %v2093_v4 = vpop.f32.mrf.mxu1 }
 0x4c4   :  { %v1697_v54 = vmax.f32 %v1597_v24, 0.0  ;;  %v2094_v63 = vadd.f32 %v2093_v4, %v2092_v19 }
 0x4c5   :  { %v2095_v10 = vpop.f32.mrf.mxu1 }
 0x4c6   :  { %v3421_v47 = vpack.c.bf16 %v1697_v54, %v1696_v61  ;;  %v1602_v53 = vadd.f32 %v2094_v63, %v3744_v15 }
 0x4c7   :  { %v2096_v34 = vpop.f32.mrf.mxu1 }
 0x4c8   :  { %v2097_v33 = vadd.f32 %v2096_v34, %v2095_v10  ;;  %v1698_v38 = vmax.f32 %v1602_v53, 0.0  ;;  %v3752_v10 = vld [vmem:[#allocation89_spill] sm:$0xff] }
 0x4c9   :  { %v2098_v2 = vpop.f32.mrf.mxu1 }
 0x4ca   :  { %v1605_v1 = vadd.f32 %v2097_v33, %v3745_v29  ;;  %v3753_v33 = vld [vmem:[#allocation91_spill] sm:$0xff] }
 0x4cb   :  { %v2099_v44 = vpop.f32.mrf.mxu1 }
 0x4cc   :  { %v1699_v14 = vmax.f32 %v1605_v1, 0.0  ;;  %v2100_v0 = vadd.f32 %v2099_v44, %v2098_v2 }
 0x4cd   :  { %v2101_v40 = vpop.f32.mrf.mxu1 }
 0x4ce   :  { %v3425_v52 = vpack.c.bf16 %v1699_v14, %v1698_v38  ;;  %v1610_v9 = vadd.f32 %v2100_v0, %v3746_v32 }
 0x4cf   :  { %v2102_v13 = vpop.f32.mrf.mxu1 }
 0x4d0   :  { %v2103_v59 = vadd.f32 %v2102_v13, %v2101_v40  ;;  %v1700_v51 = vmax.f32 %v1610_v9, 0.0 }
 0x4d1   :  { %v2104_v25 = vpop.f32.mrf.mxu1 }
 0x4d2   :  { %v1613_v7 = vadd.f32 %v2103_v59, %v3747_v48 }
 0x4d3   :  { %v2105_v41 = vpop.f32.mrf.mxu1 }
 0x4d4   :  { %v1701_v43 = vmax.f32 %v1613_v7, 0.0  ;;  %v2106_v57 = vadd.f32 %v2105_v41, %v2104_v25 }
 0x4d5   :  { %v2107_v58 = vpop.f32.mrf.mxu1 }
 0x4d6   :  { %v3429_v6 = vpack.c.bf16 %v1701_v43, %v1700_v51  ;;  %v1618_v12 = vadd.f32 %v2106_v57, %v3748_v17 }
 0x4d7   :  { %v2108_v35 = vpop.f32.mrf.mxu1 }
 0x4d8   :  { %v2109_v27 = vadd.f32 %v2108_v35, %v2107_v58  ;;  %v1702_v22 = vmax.f32 %v1618_v12, 0.0 }
 0x4d9   :  { %v2110_v18 = vpop.f32.mrf.mxu1 }
 0x4da   :  { %v1621_v36 = vadd.f32 %v2109_v27, %v3749_v62 }
 0x4db   :  { %v2111_v5 = vpop.f32.mrf.mxu1 }
 0x4dc   :  { %v1703_v30 = vmax.f32 %v1621_v36, 0.0  ;;  %v2112_v37 = vadd.f32 %v2111_v5, %v2110_v18 }
 0x4dd   :  { %v2113_v8 = vpop.f32.mrf.mxu1 }
 0x4de   :  { %v3433_v11 = vpack.c.bf16 %v1703_v30, %v1702_v22  ;;  %v1626_v42 = vadd.f32 %v2112_v37, %v3750_v3 }
 0x4df   :  { %v2114_v60 = vpop.f32.mrf.mxu1 }
 0x4e0   :  { %v2115_v46 = vadd.f32 %v2114_v60, %v2113_v8  ;;  %v1704_v19 = vmax.f32 %v1626_v42, 0.0 }
 0x4e1   :  { %v2116_v20 = vpop.f32.mrf.mxu1 }
 0x4e2   :  { %v1629_v21 = vadd.f32 %v2115_v46, %v3751_v16 }
 0x4e3   :  { %v2117_v55 = vpop.f32.mrf.mxu1 }
 0x4e4   :  { %v1705_v24 = vmax.f32 %v1629_v21, 0.0  ;;  %v2118_v4 = vadd.f32 %v2117_v55, %v2116_v20 }
 0x4e5   :  { %v2119_v61 = vpop.f32.mrf.mxu1 }
 0x4e6   :  { %v3437_v54 = vpack.c.bf16 %v1705_v24, %v1704_v19  ;;  %v1634_v34 = vadd.f32 %v2118_v4, %v3752_v10 }
 0x4e7   :  { %v2120_v63 = vpop.f32.mrf.mxu1 }
 0x4e8   :  { %v2121_v15 = vadd.f32 %v2120_v63, %v2119_v61  ;;  %v1706_v1 = vmax.f32 %v1634_v34, 0.0  ;;  %v3754_v61 = vld [vmem:[#allocation74_spill] sm:$0xff] }
 0x4e9   :  { %v2122_v53 = vpop.f32.mrf.mxu1 }
 0x4ea   :  { %v1637_v2 = vadd.f32 %v2121_v15, %v3753_v33  ;;  %v3755_v15 = vld [vmem:[#allocation78_spill] sm:$0xff] }
 0x4eb   :  { %v2123_v29 = vpop.f32.mrf.mxu1 }
 0x4ec   :  { %v1707_v44 = vmax.f32 %v1637_v2, 0.0 }
 0x4ed   :  { %v2125_v38 = vpop.f32.mrf.mxu1 }
 0x4ee   :  { %v3441_v14 = vpack.c.bf16 %v1707_v44, %v1706_v1 }
 0x4ef   :  { %v2126_v0 = vpop.f32.mrf.mxu1 }
 0x4f0   :  { %v2127_v44 = vadd.f32 %v2126_v0, %v2125_v38 }
 0x4f1   :  { %v2128_v40 = vpop.f32.mrf.mxu1 }
 0x4f3   :  { %v2129_v13 = vpop.f32.mrf.mxu1 }
 0x4f5   :  { %v2131_v32 = vpop.f32.mrf.mxu1 }
 0x4f7   :  { %v2132_v9 = vpop.f32.mrf.mxu1 }
 0x4f9   :  { %v2134_v59 = vpop.f32.mrf.mxu1 }
 0x4fb   :  { %v2135_v25 = vpop.f32.mrf.mxu1 }
 0x4fc   :  { %v2136_v4 = vadd.f32 %v2135_v25, %v2134_v59 }
 0x4fd   :  { %v2137_v48 = vpop.f32.mrf.mxu1 }
 0x4ff   :  { %v2138_v7 = vpop.f32.mrf.mxu1 }
 0x500   :  { %v2139_v16 = vadd.f32 %v2138_v7, %v2137_v48  ;;  %v3757_v48 = vld [vmem:[#allocation81_spill] sm:$0xff] }
 0x501   :  { %v2140_v41 = vpop.f32.mrf.mxu1 }
 0x503   :  { %v2141_v51 = vpop.f32.mrf.mxu1 }
 0x504   :  { %v2142_v42 = vadd.f32 %v2141_v51, %v2140_v41 }
 0x505   :  { %v2143_v43 = vpop.f32.mrf.mxu1 }
 0x506   :  { %v1666_v63 = vadd.f32 %v2142_v42, %v3754_v61 }
 0x507   :  { %v2144_v57 = vpop.f32.mrf.mxu1 }
 0x508   :  { %v2145_v37 = vadd.f32 %v2144_v57, %v2143_v43  ;;  %v3759_v43 = vld [vmem:[#allocation84_spill] sm:$0xff] }
 0x509   :  { %v2146_v58 = vpop.f32.mrf.mxu1  ;;  %v1645_v57 = vadd.f32 %v2127_v44, %v3759_v43 }
 0x50a   :  { %v1669_v21 = vadd.f32 %v2145_v37, %v3085_v49  ;;  %v1714_v49 = vmax.f32 %v1666_v63, 0.0 }
 0x50b   :  { %v2147_v35 = vpop.f32.mrf.mxu1  ;;  %v1709_v0 = vmax.f32 %v1645_v57, 0.0 }
 0x50c   :  { %v2148_v22 = vadd.f32 %v2147_v35, %v2146_v58  ;;  %v1715_v33 = vmax.f32 %v1669_v21, 0.0 }
 0x50d   :  { %v2149_v17 = vpop.f32.mrf.mxu1 }
 0x50e   :  { %v1674_v46 = vadd.f32 %v2148_v22, %v3075_v28  ;;  %v3756_v28 = vld [vmem:[#allocation77_spill] sm:$0xff]  ;;  %v1733_v7 = vpack.c.bf16 %v1715_v33, %v1714_v49 }
 0x50f   :  { %v2150_v12 = vpop.f32.mrf.mxu1  ;;  %v1658_v1 = vadd.f32 %v2136_v4, %v3756_v28 }
 0x510   :  { %v2151_v62 = vadd.f32 %v2150_v12, %v2149_v17  ;;  %v1716_v10 = vmax.f32 %v1674_v46, 0.0 }
 0x511   :  { %v2152_v27 = vpop.f32.mrf.mxu1  ;;  %v1712_v51 = vmax.f32 %v1658_v1, 0.0 }
 0x512   :  { %v1677_v8 = vadd.f32 %v2151_v62, %v3077_v39  ;;  %v2133_v39 = vadd.f32 %v2132_v9, %v2131_v32  ;;  %v2124_v32 = vadd.f32 %v2123_v29, %v2122_v53  ;;  %v3758_v9 = vld [vmem:[#allocation79_spill] sm:$0xff] }
 0x513   :  { %v2153_v18 = vpop.f32.mrf.mxu1 }
 0x514   :  { %v2154_v36 = vadd.f32 %v2153_v18, %v2152_v27  ;;  %v1717_v55 = vmax.f32 %v1677_v8, 0.0  ;;  %v1653_v59 = vadd.f32 %v2133_v39, %v3757_v48 }
 0x515   :  { %v2155_v5 = vpop.f32.mrf.mxu1 }
 0x516   :  { %v1682_v60 = vadd.f32 %v2154_v36, %v3067_v56  ;;  %v1661_v56 = vadd.f32 %v2139_v16, %v3755_v15  ;;  %v1734_v2 = vpack.c.bf16 %v1717_v55, %v1716_v10 }
 0x517   :  { %v2156_v30 = vpop.f32.mrf.mxu1 }
 0x518   :  { %v2157_v3 = vadd.f32 %v2156_v30, %v2155_v5  ;;  %v1718_v19 = vmax.f32 %v1682_v60, 0.0  ;;  %v1713_v25 = vmax.f32 %v1661_v56, 0.0 }
 0x51a   :  { %v1685_v20 = vadd.f32 %v2157_v3, %v3069_v31  ;;  %v2130_v31 = vadd.f32 %v2129_v13, %v2128_v40  ;;  %v1732_v40 = vpack.c.bf16 %v1713_v25, %v1712_v51  ;;  %v3760_v13 = vld [vmem:[#allocation83_spill] sm:$0xff] }
 0x51b   :  { %v1642_v58 = vadd.f32 %v2124_v32, %v3760_v13 }
 0x51c   :  { %v1719_v24 = vmax.f32 %v1685_v20, 0.0  ;;  %v1650_v41 = vadd.f32 %v2130_v31, %v3758_v9 }
 0x51e   :  { %v1735_v34 = vpack.c.bf16 %v1719_v24, %v1718_v19  ;;  %v1710_v38 = vmax.f32 %v1650_v41, 0.0 }
 0x520   :  { %2158 = vmatprep.subr.bf16.mxu0 %v1735_v34 }
 0x521   :  { %2159 = vmatpush3.bf16.msra.mxu0 %v3433_v11  ;;  %v1711_v11 = vmax.f32 %v1653_v59, 0.0 }
 0x522   :  { %2160 = vmatprep.subr.bf16.mxu0 %v1734_v2 }
 0x523   :  { %v1731_v35 = vpack.c.bf16 %v1711_v11, %v1710_v38 }
 0x525   :  { %2161 = vmatpush3.bf16.msra.mxu0 %v3429_v6  ;;  %v1708_v6 = vmax.f32 %v1642_v58, 0.0 }
 0x526   :  { %2162 = vmatprep.subr.bf16.mxu0 %v1733_v7 }
 0x527   :  { %v1730_v53 = vpack.c.bf16 %v1709_v0, %v1708_v6 }
 0x529   :  { %2163 = vmatpush3.bf16.msra.mxu0 %v3425_v52  ;;  %v3761_v52 = vld [vmem:[#allocation86_spill] sm:$0xff] }
 0x52a   :  { %2164 = vmatprep.subr.bf16.mxu0 %v1732_v40 }
 0x52d   :  { %2165 = vmatpush3.bf16.msra.mxu0 %v3421_v47 }
 0x52e   :  { %2166 = vmatprep.subr.bf16.mxu0 %v1731_v35 }
 0x531   :  { %2167 = vmatpush3.bf16.msra.mxu0 %v3417_v26  ;;  %v3762_v26 = vld [vmem:[#allocation101_spill] sm:$0xff] }
 0x532   :  { %2168 = vmatprep.subr.bf16.mxu0 %v1730_v53 }
 0x535   :  { %2169 = vmatpush3.bf16.msra.mxu0 %v3413_v50 }
 0x536   :  { %2170 = vmatprep.subr.bf16.mxu0 %v3441_v14 }
 0x539   :  { %2171 = vmatpush3.bf16.msra.mxu0 %v3409_v45 }
 0x53a   :  { %2172 = vmatprep.subr.bf16.mxu0 %v3437_v54 }
 0x53d   :  { %2173 = vmatpush3.bf16.msra.mxu0 %v3405_v23 }
 0x540   :  { %1769 = vmatmul.mubr.bf16.vlgmr.msra.gmra.mxu0 %v3761_v52 }
 0x600   :  { %v2174_v29 = vpop.f32.mrf.mxu0 }
 0x602   :  { %v2175_v47 = vpop.f32.mrf.mxu0 }
 0x603   :  { %v2176_v17 = vadd.f32 %v2175_v47, %v2174_v29 }
 0x604   :  { %v2177_v12 = vpop.f32.mrf.mxu0 }
 0x605   :  { %v1771_v27 = vadd.f32 %v2176_v17, %v3762_v26 }
 0x606   :  { %v2178_v50 = vpop.f32.mrf.mxu0 }
 0x607   :  { %1777 = vst [vmem:[#allocation5 + $0x8] sm:$0xff] %v1771_v27 }
 0x608   :  { %2415 = shalt.err (!%p2412_p9)
}
 0x609   :  { %s2433_s29 = smov 128   ;;  %s2434_s30 = smov 8  }
 0x60a   :  { %1789 = dma.vmem_to_hbm [thread:$0]  %s1784_s28, 256, %s3478_s8, [#allocation4], %s2433_s29, %s2433_s29, %s2434_s30  }
 0x60b   :  { %2426 = dma.done.wait [#allocation4], 256  }
 0x60c   :  { %2427 = vsyncadd [#allocation4], 4294967040 }
 0x60d   :  { %1793 = vsyncpa [#allocation3], 1 }
 0x60e   :  { %1794 = vsyncpa [#allocation4], 1 }

</bundles_post_ra>
